<compile_context>
chip_gen: v7x
topology: tpu7x:2x2x1
jax: 0.10.0
libtpu: 0.0.40
codegen_flags: <defaults>
</compile_context>

<pallas_src>
import jax
import jax.numpy as jnp
from jax import lax
from jax.experimental import pallas as pl
from jax.experimental.pallas import tpu as pltpu

EPS = 1e-5
LANES = 128                 # padded im2col K / matmul N width (one MXU tile)
MXU_DTYPE = jnp.bfloat16    # bf16 operands, f32 accumulation


# --------------------------------------------------------------------------- #
# conv3x3 (+ optional fused input BN/ReLU) + per-tile BN partial stats kernel  #
# --------------------------------------------------------------------------- #
def _make_conv_stats_kernel(tr, w_img, h_img, cin, cout, apply_input_bn):
    kdim = 9 * cin

    def kernel(*refs):
        if apply_input_bn:
            prev_ref, cur_ref, nxt_ref, w_ref, s_ref, t_ref, y_ref, stats_ref = refs
        else:
            prev_ref, cur_ref, nxt_ref, w_ref, y_ref, stats_ref = refs

        i = pl.program_id(0)

        # halo'd input slab for this row-tile: rows [i*tr - 1, i*tr + tr + 1)
        xx = jnp.concatenate([prev_ref[...], cur_ref[...], nxt_ref[...]], axis=0)
        if apply_input_bn:
            # previous layer's BatchNorm + ReLU fused into this conv's input
            xx = jnp.maximum(xx * s_ref[...][None] + t_ref[...][None], 0.0)

        # "same" padding along W fused as a physical zero column on each side.
        zcol = jnp.zeros((tr + 2, 1, cin), xx.dtype)
        xxe = jnp.concatenate([zcol, xx, zcol], axis=1)       # (tr+2, w+2, cin)

        # hoisted image top/bottom row masks (vertical "same" padding; also
        # isolates images — halo rows may belong to the neighbouring image).
        r = lax.broadcasted_iota(jnp.int32, (tr, 1, 1), 0)
        hh = (i * tr + r) % h_img
        not_top = hh != 0
        not_bot = hh != (h_img - 1)

        # im2col: 9 static tap slices lane-concatenated into one (tr*w, 128)
        # slab fed straight to a single MXU matmul (no scratch round-trip, no
        # narrow masked stores, no stale-lane hazard — padding lanes are zero).
        taps = []
        for dy in (-1, 0, 1):
            rows = xxe[1 + dy:1 + dy + tr]                    # (tr, w+2, cin)
            if dy == -1:
                rows = jnp.where(not_top, rows, 0.0)
            elif dy == 1:
                rows = jnp.where(not_bot, rows, 0.0)
            for dx in (-1, 0, 1):
                taps.append(rows[:, 1 + dx:1 + dx + w_img, :])
        if kdim < LANES:
            taps.append(jnp.zeros((tr, w_img, LANES - kdim), xx.dtype))
        patch = jnp.concatenate(taps, axis=-1).reshape(tr * w_img, LANES)

        acc = jnp.dot(patch.astype(MXU_DTYPE), w_ref[...],
                      preferred_element_type=jnp.float32)     # (tr*w, 128) f32

        # pre-BN conv output: only the real cout lanes go back to HBM
        y_ref[...] = acc[:, :cout].reshape(tr, w_img, cout)

        # per-tile BatchNorm partial stats, computed while acc is VMEM-resident
        ssum = jnp.sum(acc, axis=0, keepdims=True)
        ssq = jnp.sum(acc * acc, axis=0, keepdims=True)
        stats_ref[...] = jnp.concatenate(
            [ssum, ssq, jnp.zeros((6, LANES), jnp.float32)], axis=0)[None]

    return kernel


def _vmem_limit_bytes(tr, w_img, cin, cout):
    # rough per-step footprint (channels counted as a full 128-lane layout),
    # x2 for double buffering, plus in-kernel slabs (halo'd copies, patch
    # f32+bf16, accumulator), with extra margin; floor 32 MiB, cap 100 MiB.
    del cin, cout
    px = tr * w_img
    blocks = (px + 2 * w_img) * LANES * 4          # input tile + halos
    blocks += LANES * LANES * 2 + 2 * LANES * 4    # bf16 weights + scale/shift
    blocks += px * LANES * 4 + 8 * LANES * 4       # pre-BN out + stats blocks
    slabs = px * LANES * (4 + 2 + 4) + 3 * (px + 2 * w_img) * LANES * 4
    est = 2 * blocks + slabs
    return int(min(max(2 * est, 32 * 1024 * 1024), 100 * 1024 * 1024))


def _conv_bn_stats(x_rows, w_mat, h_img, cout, tr, in_scale=None, in_shift=None):
    """conv3x3 over (N*H, W, Cin) rows -> (pre-BN output, per-tile BN partials)."""
    r_rows, w_img, cin = x_rows.shape
    ntiles = r_rows // tr
    apply_input_bn = in_scale is not None

    in_specs = [
        # one-row top/bottom halo blocks (clamped at the global edges; clamped
        # rows are always removed by the in-kernel image-boundary masks)
        pl.BlockSpec((1, w_img, cin), lambda i: (jnp.maximum(i * tr - 1, 0), 0, 0)),
        pl.BlockSpec((tr, w_img, cin), lambda i: (i, 0, 0)),
        pl.BlockSpec((1, w_img, cin),
                     lambda i: (jnp.minimum(i * tr + tr, r_rows - 1), 0, 0)),
        pl.BlockSpec((LANES, LANES), lambda i: (0, 0)),      # resident bf16 weights
    ]
    args = [x_rows, x_rows, x_rows, w_mat]
    if apply_input_bn:
        in_specs += [pl.BlockSpec((1, cin), lambda i: (0, 0))] * 2
        args += [in_scale, in_shift]

    out_shape = (jax.ShapeDtypeStruct((r_rows, w_img, cout), jnp.float32),
                 jax.ShapeDtypeStruct((ntiles, 8, LANES), jnp.float32))
    out_specs = (pl.BlockSpec((tr, w_img, cout), lambda i: (i, 0, 0)),
                 pl.BlockSpec((1, 8, LANES), lambda i: (i, 0, 0)))

    return pl.pallas_call(
        _make_conv_stats_kernel(tr, w_img, h_img, cin, cout, apply_input_bn),
        grid=(ntiles,),
        in_specs=in_specs,
        out_specs=out_specs,
        out_shape=out_shape,
        compiler_params=pltpu.CompilerParams(
            dimension_semantics=("parallel",),
            vmem_limit_bytes=_vmem_limit_bytes(tr, w_img, cin, cout)),
    )(*args)


def _bn_scale_shift(stats, gamma, beta, n_pixels, cout):
    """Tiny plain-JAX reduction of the per-tile partials -> per-channel scale/shift."""
    ssum = jnp.sum(stats[:, 0, :cout], axis=0)
    ssq = jnp.sum(stats[:, 1, :cout], axis=0)
    mean = ssum / n_pixels
    # TODO(synk): one-pass variance (E[x^2]-E[x]^2); switch to Welford partials
    # if activations ever carry a large common-mode offset.
    var = ssq / n_pixels - mean * mean
    scale = gamma * lax.rsqrt(var + EPS)
    shift = beta - mean * scale
    return (scale.reshape(1, cout).astype(jnp.float32),
            shift.reshape(1, cout).astype(jnp.float32))


def _bn_relu(y_rows, scale, shift, tr):
    """Tiled pointwise BN+ReLU epilogue."""
    r_rows, w_img, c = y_rows.shape
    ntiles = r_rows // tr

    def kernel(y_ref, s_ref, t_ref, o_ref):
        o_ref[...] = jnp.maximum(y_ref[...] * s_ref[...][None] + t_ref[...][None], 0.0)

    return pl.pallas_call(
        kernel,
        grid=(ntiles,),
        in_specs=[pl.BlockSpec((tr, w_img, c), lambda i: (i, 0, 0)),
                  pl.BlockSpec((1, c), lambda i: (0, 0)),
                  pl.BlockSpec((1, c), lambda i: (0, 0))],
        out_specs=pl.BlockSpec((tr, w_img, c), lambda i: (i, 0, 0)),
        out_shape=jax.ShapeDtypeStruct((r_rows, w_img, c), jnp.float32),
        compiler_params=pltpu.CompilerParams(dimension_semantics=("parallel",)),
    )(y_rows, scale, shift)


# --------------------------------------------------------------------------- #
# wrappers                                                                     #
# --------------------------------------------------------------------------- #
def _im2col_weight(wt):
    # torch (Cout, Cin, 3, 3) -> (ky, kx, ci, co) -> (9*Cin, Cout), zero-padded
    # to a full 128x128 MXU tile, stored bf16.
    co, ci, kh, kw = wt.shape
    wm = jnp.transpose(wt, (2, 3, 1, 0)).reshape(kh * kw * ci, co)
    full = jnp.zeros((LANES, LANES), jnp.float32).at[:kh * kw * ci, :co].set(wm)
    return full.astype(MXU_DTYPE)


def _pick_row_tile(r_rows, w_img, row_tile=None):
    if row_tile is not None:
        assert r_rows % row_tile == 0, "row_tile must divide N*H"
        return row_tile
    cap = max(1, 2048 // max(w_img, 1))   # ~2048 px (~1 MiB f32 im2col slab) / step
    best = 1
    for d in range(1, r_rows + 1):
        if r_rows % d == 0 and d <= cap:
            best = d
    return best


def double_conv_forward_nhwc(x_nhwc, params, row_tile=None):
    """Core Pallas forward in NHWC: (N, H, W, Cin) -> (N, H, W, Cout)."""
    n, h, w, cin = x_nhwc.shape
    cout = params["w1"].shape[0]
    assert params["w1"].shape[2:] == (3, 3), "kernel is specialized to k=3"
    # TODO(synk): for Cin/Cout > 14 drop this and accumulate over a K loop
    # (256-deep bf16 K/N tiles on v6e/v7x, 128 on v5e).
    assert 9 * cin <= LANES and 9 * cout <= LANES, (
        "channel count too large for a single 128-wide im2col K tile")

    r_rows = n * h
    tr = _pick_row_tile(r_rows, w, row_tile)
    n_pixels = n * h * w

    x_rows = x_nhwc.reshape(r_rows, w, cin).astype(jnp.float32)
    w1 = _im2col_weight(params["w1"])
    w2 = _im2col_weight(params["w2"])

    # conv1 -> per-tile BN1 partials      (conv bias cancels with the BN mean)
    y1hat, stats1 = _conv_bn_stats(x_rows, w1, h, cout, tr)
    s1, t1 = _bn_scale_shift(stats1, params["g1"], params["be1"], n_pixels, cout)

    # BN1+ReLU fused into conv2's input -> conv2 -> per-tile BN2 partials
    y2hat, stats2 = _conv_bn_stats(y1hat, w2, h, cout, tr, s1, t1)
    s2, t2 = _bn_scale_shift(stats2, params["g2"], params["be2"], n_pixels, cout)

    # BN2 + ReLU epilogue
    out_rows = _bn_relu(y2hat, s2, t2, tr)
    return out_rows.reshape(n, h, w, cout)


def double_conv_forward(x_nchw, params, row_tile=None):
    """PyTorch-layout entry point: (N, Cin, H, W) -> (N, Cout, H, W)."""
    # Callers that can consume NHWC should use double_conv_forward_nhwc directly
    # and skip these two HBM-round-trip transposes.
    x = jnp.transpose(x_nchw, (0, 2, 3, 1))
    y = double_conv_forward_nhwc(x, params, row_tile)
    return jnp.transpose(y, (0, 3, 1, 2))


def double_conv_reference(x_nchw, params):
    """Plain-JAX reference matching PyTorch training-mode forward (with biases)."""
    def block(x, wt, b, g, be):
        y = lax.conv_general_dilated(
            x, wt, window_strides=(1, 1), padding="SAME",
            dimension_numbers=("NCHW", "OIHW", "NCHW"))
        y = y + b[None, :, None, None]
        mean = jnp.mean(y, axis=(0, 2, 3), keepdims=True)
        var = jnp.mean((y - mean) ** 2, axis=(0, 2, 3), keepdims=True)
        y = (y - mean) / jnp.sqrt(var + EPS)
        y = y * g[None, :, None, None] + be[None, :, None, None]
        return jnp.maximum(y, 0.0)

    y = block(x_nchw, params["w1"], params["b1"], params["g1"], params["be1"])
    return block(y, params["w2"], params["b2"], params["g2"], params["be2"])


def make_params(key, in_ch, out_ch, k=3):
    ks = jax.random.split(key, 8)
    return {
        "w1": 0.1 * jax.random.normal(ks[0], (out_ch, in_ch, k, k), jnp.float32),
        "b1": 0.1 * jax.random.normal(ks[1], (out_ch,), jnp.float32),
        # PyTorch init is gamma=1 / beta=0; use non-trivial values to exercise
        # the affine path (reference uses the same values).
        "g1": 1.0 + 0.1 * jax.random.normal(ks[2], (out_ch,), jnp.float32),
        "be1": 0.1 * jax.random.normal(ks[3], (out_ch,), jnp.float32),
        "w2": 0.1 * jax.random.normal(ks[4], (out_ch, out_ch, k, k), jnp.float32),
        "b2": 0.1 * jax.random.normal(ks[5], (out_ch,), jnp.float32),
        "g2": 1.0 + 0.1 * jax.random.normal(ks[6], (out_ch,), jnp.float32),
        "be2": 0.1 * jax.random.normal(ks[7], (out_ch,), jnp.float32),
    }


if __name__ == "__main__":
    N, Cin, Cout, H, W = 2, 4, 8, 16, 16
    key = jax.random.PRNGKey(0)
    kx, kp = jax.random.split(key)
    x = jax.random.normal(kx, (N, Cin, H, W), jnp.float32)
    params = make_params(kp, Cin, Cout, k=3)

    # row_tile=8 -> 4 grid steps: exercises halo reads both mid-image and across
    # the image boundary, and the cross-tile BN-partials reduction, at toy sizes.
    out = jax.block_until_ready(double_conv_forward(x, params, row_tile=8))
    ref = double_conv_reference(x, params)

    assert out.shape == (N, Cout, H, W)
    tol = 5e-2   # bf16 MXU operands
    err = jnp.max(jnp.abs(out - ref))
    assert jnp.allclose(out, ref, atol=tol, rtol=tol), f"max abs err = {err}"

    print("KERNEL_OK")
</pallas_src>

<mosaic_0001>
module attributes {stable_mosaic.version = 11 : i64} {
  func.func @kernel(%arg0: i32, %arg1: memref<1x16x4xf32, #tpu.memory_space<vmem>>, %arg2: memref<8x16x4xf32, #tpu.memory_space<vmem>>, %arg3: memref<1x16x4xf32, #tpu.memory_space<vmem>>, %arg4: memref<128x128xbf16, #tpu.memory_space<vmem>>, %arg5: memref<8x16x8xf32, #tpu.memory_space<vmem>>, %arg6: memref<1x8x128xf32, #tpu.memory_space<vmem>>) attributes {dimension_semantics = [#tpu.dimension_semantics<parallel>], iteration_bounds = array<i64: 4>, scalar_prefetch = 0 : i64, scratch_operands = 0 : i64, tpu.core_type = #tpu.core_type<tc>, window_params = [{transform_indices = @transform_0, window_bounds = array<i64: 1, 16, 4>}, {transform_indices = @transform_1, window_bounds = array<i64: 8, 16, 4>}, {transform_indices = @transform_2, window_bounds = array<i64: 1, 16, 4>}, {pipeline_mode = #tpu.pipeline_mode<synchronous>, transform_indices = @transform_3, window_bounds = array<i64: 128, 128>}, {transform_indices = @transform_4, window_bounds = array<i64: 8, 16, 8>}, {transform_indices = @transform_5, window_bounds = array<i64: 1, 8, 128>}]} {
    %c0 = arith.constant 0 : index
    %c0_0 = arith.constant 0 : index
    %c0_1 = arith.constant 0 : index
    %0 = vector.load %arg1[%c0, %c0_0, %c0_1] : memref<1x16x4xf32, #tpu.memory_space<vmem>>, vector<1x16x4xf32>
    %c0_2 = arith.constant 0 : index
    %c0_3 = arith.constant 0 : index
    %c0_4 = arith.constant 0 : index
    %1 = vector.load %arg2[%c0_2, %c0_3, %c0_4] : memref<8x16x4xf32, #tpu.memory_space<vmem>>, vector<8x16x4xf32>
    %c0_5 = arith.constant 0 : index
    %c0_6 = arith.constant 0 : index
    %c0_7 = arith.constant 0 : index
    %2 = vector.load %arg3[%c0_5, %c0_6, %c0_7] : memref<1x16x4xf32, #tpu.memory_space<vmem>>, vector<1x16x4xf32>
    %3 = tpu.concatenate %0, %1, %2 in 0 : vector<1x16x4xf32>, vector<8x16x4xf32>, vector<1x16x4xf32> -> vector<10x16x4xf32>
    %cst = arith.constant 0.000000e+00 : f32
    %4 = vector.broadcast %cst : f32 to vector<10x1x4xf32>
    %5 = tpu.concatenate %4, %3, %4 in 1 : vector<10x1x4xf32>, vector<10x16x4xf32>, vector<10x1x4xf32> -> vector<10x18x4xf32>
    %6 = tpu.iota {dimensions = array<i32: 0>} : vector<8x1x1xi32>
    %c8_i32 = arith.constant 8 : i32
    %7 = arith.muli %arg0, %c8_i32 : i32
    %8 = vector.broadcast %7 : i32 to vector<8x1x1xi32>
    %9 = arith.addi %8, %6 : vector<8x1x1xi32>
    %c16_i32 = arith.constant 16 : i32
    %c0_i32 = arith.constant 0 : i32
    %10 = arith.cmpi eq, %c16_i32, %c0_i32 : i32
    %c1_i32 = arith.constant 1 : i32
    %11 = arith.select %10, %c1_i32, %c16_i32 : i32
    %12 = vector.broadcast %11 : i32 to vector<8x1x1xi32>
    %13 = arith.remsi %9, %12 : vector<8x1x1xi32>
    %c0_i32_8 = arith.constant 0 : i32
    %14 = vector.broadcast %c0_i32_8 : i32 to vector<8x1x1xi32>
    %15 = arith.cmpi ne, %13, %14 : vector<8x1x1xi32>
    %c0_i32_9 = arith.constant 0 : i32
    %16 = vector.broadcast %c0_i32_9 : i32 to vector<8x1x1xi32>
    %17 = arith.cmpi slt, %13, %16 : vector<8x1x1xi32>
    %c0_i32_10 = arith.constant 0 : i32
    %18 = arith.cmpi slt, %11, %c0_i32_10 : i32
    %19 = vector.broadcast %18 : i1 to vector<8x1x1xi1>
    %20 = vector.broadcast %19 : vector<8x1x1xi1> to vector<8x1x1xi1>
    %21 = arith.xori %17, %20 : vector<8x1x1xi1>
    %22 = arith.andi %21, %15 : vector<8x1x1xi1>
    %23 = vector.broadcast %11 : i32 to vector<8x1x1xi32>
    %24 = arith.addi %13, %23 : vector<8x1x1xi32>
    %25 = arith.select %22, %24, %13 : vector<8x1x1xi1>, vector<8x1x1xi32>
    %c0_i32_11 = arith.constant 0 : i32
    %26 = vector.broadcast %c0_i32_11 : i32 to vector<8x1x1xi32>
    %27 = arith.cmpi ne, %25, %26 : vector<8x1x1xi32>
    %c15_i32 = arith.constant 15 : i32
    %28 = vector.broadcast %c15_i32 : i32 to vector<8x1x1xi32>
    %29 = arith.cmpi ne, %25, %28 : vector<8x1x1xi32>
    %30 = vector.extract_strided_slice %5 {offsets = [0, 0, 0], sizes = [8, 18, 4], strides = [1, 1, 1]} : vector<10x18x4xf32> to vector<8x18x4xf32>
    %cst_12 = arith.constant 0.000000e+00 : f32
    %31 = vector.shape_cast %27 : vector<8x1x1xi1> to vector<8x1x1xi1>
    %32 = vector.broadcast %31 : vector<8x1x1xi1> to vector<8x18x4xi1>
    %33 = vector.broadcast %cst_12 : f32 to vector<8x18x4xf32>
    %34 = arith.select %32, %30, %33 : vector<8x18x4xi1>, vector<8x18x4xf32>
    %35 = vector.extract_strided_slice %34 {offsets = [0, 0, 0], sizes = [8, 16, 4], strides = [1, 1, 1]} : vector<8x18x4xf32> to vector<8x16x4xf32>
    %36 = vector.extract_strided_slice %34 {offsets = [0, 1, 0], sizes = [8, 16, 4], strides = [1, 1, 1]} : vector<8x18x4xf32> to vector<8x16x4xf32>
    %37 = vector.extract_strided_slice %34 {offsets = [0, 2, 0], sizes = [8, 16, 4], strides = [1, 1, 1]} : vector<8x18x4xf32> to vector<8x16x4xf32>
    %38 = vector.extract_strided_slice %5 {offsets = [1, 0, 0], sizes = [8, 18, 4], strides = [1, 1, 1]} : vector<10x18x4xf32> to vector<8x18x4xf32>
    %39 = vector.extract_strided_slice %38 {offsets = [0, 0, 0], sizes = [8, 16, 4], strides = [1, 1, 1]} : vector<8x18x4xf32> to vector<8x16x4xf32>
    %40 = vector.extract_strided_slice %38 {offsets = [0, 1, 0], sizes = [8, 16, 4], strides = [1, 1, 1]} : vector<8x18x4xf32> to vector<8x16x4xf32>
    %41 = vector.extract_strided_slice %38 {offsets = [0, 2, 0], sizes = [8, 16, 4], strides = [1, 1, 1]} : vector<8x18x4xf32> to vector<8x16x4xf32>
    %42 = vector.extract_strided_slice %5 {offsets = [2, 0, 0], sizes = [8, 18, 4], strides = [1, 1, 1]} : vector<10x18x4xf32> to vector<8x18x4xf32>
    %cst_13 = arith.constant 0.000000e+00 : f32
    %43 = vector.shape_cast %29 : vector<8x1x1xi1> to vector<8x1x1xi1>
    %44 = vector.broadcast %43 : vector<8x1x1xi1> to vector<8x18x4xi1>
    %45 = vector.broadcast %cst_13 : f32 to vector<8x18x4xf32>
    %46 = arith.select %44, %42, %45 : vector<8x18x4xi1>, vector<8x18x4xf32>
    %47 = vector.extract_strided_slice %46 {offsets = [0, 0, 0], sizes = [8, 16, 4], strides = [1, 1, 1]} : vector<8x18x4xf32> to vector<8x16x4xf32>
    %48 = vector.extract_strided_slice %46 {offsets = [0, 1, 0], sizes = [8, 16, 4], strides = [1, 1, 1]} : vector<8x18x4xf32> to vector<8x16x4xf32>
    %49 = vector.extract_strided_slice %46 {offsets = [0, 2, 0], sizes = [8, 16, 4], strides = [1, 1, 1]} : vector<8x18x4xf32> to vector<8x16x4xf32>
    %cst_14 = arith.constant 0.000000e+00 : f32
    %50 = vector.broadcast %cst_14 : f32 to vector<8x16x92xf32>
    %51 = tpu.concatenate %35, %36, %37, %39, %40, %41, %47, %48, %49, %50 in 2 : vector<8x16x4xf32>, vector<8x16x4xf32>, vector<8x16x4xf32>, vector<8x16x4xf32>, vector<8x16x4xf32>, vector<8x16x4xf32>, vector<8x16x4xf32>, vector<8x16x4xf32>, vector<8x16x4xf32>, vector<8x16x92xf32> -> vector<8x16x128xf32>
    %52 = vector.shape_cast %51 : vector<8x16x128xf32> to vector<128x128xf32>
    %53 = arith.truncf %52 : vector<128x128xf32> to vector<128x128xbf16>
    %c0_15 = arith.constant 0 : index
    %c0_16 = arith.constant 0 : index
    %54 = vector.load %arg4[%c0_15, %c0_16] : memref<128x128xbf16, #tpu.memory_space<vmem>>, vector<128x128xbf16>
    %cst_17 = arith.constant dense<0.000000e+00> : vector<128x128xf32>
    %55 = tpu.matmul %53, %54, %cst_17 {dimension_numbers = #tpu.dot_dimension_numbers<[1], [0], [0], [1], [0, 0, 1, 1], [], []>} : vector<128x128xbf16>, vector<128x128xbf16>, vector<128x128xf32> -> vector<128x128xf32>
    %56 = vector.extract_strided_slice %55 {offsets = [0, 0], sizes = [128, 8], strides = [1, 1]} : vector<128x128xf32> to vector<128x8xf32>
    %57 = vector.shape_cast %56 : vector<128x8xf32> to vector<8x16x8xf32>
    %c0_18 = arith.constant 0 : index
    %c0_19 = arith.constant 0 : index
    %c0_20 = arith.constant 0 : index
    %58 = vector.load %arg5[%c0_18, %c0_19, %c0_20] : memref<8x16x8xf32, #tpu.memory_space<vmem>>, vector<8x16x8xf32>
    tpu.vector_store %arg5[%c0_18, %c0_19, %c0_20], %57 {strides = array<i32>} : memref<8x16x8xf32, #tpu.memory_space<vmem>>, vector<8x16x8xf32>,
    %cst_21 = arith.constant dense<0.000000e+00> : vector<128xf32>
    %59 = vector.multi_reduction <add>, %55, %cst_21 [0] : vector<128x128xf32> to vector<128xf32>
    %60 = vector.shape_cast %59 : vector<128xf32> to vector<1x128xf32>
    %61 = arith.mulf %55, %55 : vector<128x128xf32>
    %cst_22 = arith.constant dense<0.000000e+00> : vector<128xf32>
    %62 = vector.multi_reduction <add>, %61, %cst_22 [0] : vector<128x128xf32> to vector<128xf32>
    %63 = vector.shape_cast %62 : vector<128xf32> to vector<1x128xf32>
    %cst_23 = arith.constant 0.000000e+00 : f32
    %64 = vector.broadcast %cst_23 : f32 to vector<6x128xf32>
    %65 = tpu.concatenate %60, %63, %64 in 0 : vector<1x128xf32>, vector<1x128xf32>, vector<6x128xf32> -> vector<8x128xf32>
    %66 = vector.shape_cast %65 : vector<8x128xf32> to vector<1x8x128xf32>
    %c0_24 = arith.constant 0 : index
    %c0_25 = arith.constant 0 : index
    %c0_26 = arith.constant 0 : index
    %67 = vector.load %arg6[%c0_24, %c0_25, %c0_26] : memref<1x8x128xf32, #tpu.memory_space<vmem>>, vector<1x8x128xf32>
    tpu.vector_store %arg6[%c0_24, %c0_25, %c0_26], %66 {strides = array<i32>} : memref<1x8x128xf32, #tpu.memory_space<vmem>>, vector<1x8x128xf32>,
    return
  }
  func.func @transform_0(%arg0: i32) -> (i32, i32, i32) {
    %c8_i32 = arith.constant 8 : i32
    %0 = arith.muli %arg0, %c8_i32 : i32
    %c1_i32 = arith.constant 1 : i32
    %1 = arith.subi %0, %c1_i32 : i32
    %c0_i32 = arith.constant 0 : i32
    %2 = arith.maxsi %1, %c0_i32 : i32
    %c0_i32_0 = arith.constant 0 : i32
    %c0_i32_1 = arith.constant 0 : i32
    %c0_i32_2 = arith.constant 0 : i32
    return %2, %c0_i32_0, %c0_i32_1 : i32, i32, i32
  }
  func.func @transform_1(%arg0: i32) -> (i32, i32, i32) {
    %c0_i32 = arith.constant 0 : i32
    %c0_i32_0 = arith.constant 0 : i32
    %c0_i32_1 = arith.constant 0 : i32
    return %arg0, %c0_i32, %c0_i32_0 : i32, i32, i32
  }
  func.func @transform_2(%arg0: i32) -> (i32, i32, i32) {
    %c8_i32 = arith.constant 8 : i32
    %0 = arith.muli %arg0, %c8_i32 : i32
    %c8_i32_0 = arith.constant 8 : i32
    %1 = arith.addi %0, %c8_i32_0 : i32
    %c31_i32 = arith.constant 31 : i32
    %2 = arith.minsi %1, %c31_i32 : i32
    %c0_i32 = arith.constant 0 : i32
    %c0_i32_1 = arith.constant 0 : i32
    %c0_i32_2 = arith.constant 0 : i32
    return %2, %c0_i32, %c0_i32_1 : i32, i32, i32
  }
  func.func @transform_3(%arg0: i32) -> (i32, i32) {
    %c0_i32 = arith.constant 0 : i32
    %c0_i32_0 = arith.constant 0 : i32
    %c0_i32_1 = arith.constant 0 : i32
    return %c0_i32, %c0_i32_0 : i32, i32
  }
  func.func @transform_4(%arg0: i32) -> (i32, i32, i32) {
    %c0_i32 = arith.constant 0 : i32
    %c0_i32_0 = arith.constant 0 : i32
    %c0_i32_1 = arith.constant 0 : i32
    return %arg0, %c0_i32, %c0_i32_0 : i32, i32, i32
  }
  func.func @transform_5(%arg0: i32) -> (i32, i32, i32) {
    %c0_i32 = arith.constant 0 : i32
    %c0_i32_0 = arith.constant 0 : i32
    %c0_i32_1 = arith.constant 0 : i32
    return %arg0, %c0_i32, %c0_i32_0 : i32, i32, i32
  }
}

</mosaic_0001>

<bundles_post_ra>
// kernel: tpu_custom_call.1
= control target key start
LH: loop header
LB: loop body
LE: loop exit
PB: predicated region body
PF: predicated region fallthrough
CT: control target
= control target key end

     0   :  { %11 = vsyncpa [#allocation3], 0  ;;  %s3536_s0 = inlined_call_operand.vmem [shape: f32[32,16,4], index: 0, kind: input, shape index: {}]   ;;  %s3537_s1 = inlined_call_operand.vmem [shape: f32[32,16,4], index: 1, kind: input, shape index: {}]   ;;  %s3538_s2 = inlined_call_operand.vmem [shape: f32[32,16,4], index: 2, kind: input, shape index: {}]   ;;  %s3539_s3 = inlined_call_operand.vmem [shape: bf16[128,128], index: 3, kind: input, shape index: {}]   ;;  %s3540_s4 = inlined_call_operand.vmem [shape: f32[32,16,8], index: 4, kind: output, shape index: {0}]   ;;  %s3541_s5 = inlined_call_operand.hbm [shape: f32[4,8,128], index: 5, kind: output, shape index: {1}]  }
   0x1   :  { %13 = vsyncpa [#allocation3 + $0x1], 0  ;;  %s2515_s18 = smov 0   ;;  %s2517_s19 = smov 0  }
   0x2   :  { %s2519_s20 = smov 0   ;;  %s2521_s21 = smov 0  }
   0x3 LB: > { %s2536_s22 = sadd.s32 4294967295, %s2474_s21   ;;  %s1886_s23 = sadd.s32 4294967294, %s2474_s21   ;;  %s2474_s21 = sphi %s2521_s21, %s3550_s21   ;;  %s2470_s20 = sphi %s2519_s20, %s3549_s20   ;;  %s2466_s19 = sphi %s2517_s19, %s3548_s19   ;;  %s2462_s18 = sphi %s2515_s18, %s3547_s18  }
   0x4   : > { %s2540_s24 = sadd.s32 1, %s2474_s21   ;;  %s167_s25 = sadd.s32 1, %s2470_s20 }
   0x5   : > { %s164_s26 = ssub.s32 %s2474_s21, %s2540_s24  ;;  %p177_p0 = scmp.ne.s32.totalorder %s2470_s20, %s2466_s19 }
   0x6   : > { %p165_p1 = scmp.eq.s32.totalorder %s164_s26, 0  ;;  %p178_p2 = scmp.eq.s32.totalorder %s2536_s22, 3 }
   0x7   : > { %p183_p3 = scmp.ne.s32.totalorder %s2466_s19, %s2462_s18  ;;  %p184_p4 = scmp.eq.s32.totalorder %s1886_s23, 3 }
   0x8   : > { %s2551_s27 = scalar_select %p165_p1, %s2470_s20, %s167_s25  }
   0x9   : > { %p2553_p5 = por %p178_p2, %p177_p0  ;;  %p2557_p6 = por %p184_p4, %p183_p3 }
   0xa   : > { %p1895_p7 = scmp.ge.s32.totalorder %s2474_s21, 1  ;;  %p247_p8 = scmp.lt.s32.totalorder %s2474_s21, 5 }
   0xc   : > { %p248_p9 = pnand %p1895_p7, %p247_p8 }
   0xd   : > { %s2564_s30 = sshll.u32 (!%p248_p9), %s2536_s22, 3  ;;  %vm381_vm0 = vcmask (!%p248_p9), 1040384   ;;  %vm687_vm1 = vcmask (!%p248_p9), 1046528   ;;  %vm776_vm3 = vcmask (!%p248_p9), 1045504   ;;  %s2476_s14 = smov (!%p248_p9), 12   ;;  %v2404_v48 = vld [vmem:[%s3539_s3] sm:$0xff] (!%p248_p9)  }
   0xe   : > { %251 = sbr.rel (%p248_p9) target bundleno = 534 (0x216), region = 36  ;;  %p314_p10 = scmp.lt.s32.totalorder (!%p248_p9), %s2564_s30, 31  ;;  %v2568_v0 = vstv (!%p248_p9), %s2564_s30  ;;  %1989 = vmatprep.subr.bf16.mxu0 (!%p248_p9), %v2404_v48  ;;  %v2405_v58 = vld [vmem:[%s3539_s3 + $0x8] sm:$0xff] (!%p248_p9)   ;;  %2021 = vmatprep.subr.bf16.mxu1 (!%p248_p9), %v2404_v48 }
   0xf   : > { %v464_v1 = vadd.s32 (!%p248_p9), 1, %v2568_v0  ;;  %v472_v2 = vsub.s32 (!%p248_p9), 0, %v2568_v0  ;;  %v2573_v3 = vadd.s32 (!%p248_p9), 2, %v2568_v0  ;;  %v2579_v4 = vadd.s32 (!%p248_p9), 3, %v2568_v0  ;;  %s2585_s7 = sadd.s32 (!%p248_p9), 4294967295, %s2564_s30  ;;  %s2477_s26 = smov (!%p248_p9), 16   ;;  %1990 = vmatpush3.bf16.msra.mxu0 (!%p248_p9), %v2404_v48  ;;  %2029 = vmatpush3.bf16.msra.mxu1 (!%p248_p9), %v2404_v48 }
  0x10   : > { %p302_p11 = scmp.gt.s32.totalorder (!%p248_p9), %s2585_s7, 0  ;;  %p1899_p12 = scmp.lt.s32.totalorder (!%p248_p9), %s2585_s7, 31  ;;  %v2600_v10 = vadd.s32 (!%p248_p9), 4, %v2568_v0  ;;  %v2603_v11 = vadd.s32 (!%p248_p9), 5, %v2568_v0  ;;  %vm471_vm4 = vcmp.lt.s32.totalorder (!%p248_p9), %v2568_v0, 0  ;;  %1991 = vmatprep.subr.bf16.mxu0 (!%p248_p9), %v2405_v58  ;;  %2022 = vmatprep.subr.bf16.mxu1 (!%p248_p9), %v2405_v58 }
  0x11   : > { %v479_v5 = vsub.s32 (!%p248_p9), 0, %v464_v1  ;;  %v2582_v6 = vmin.u32 (!%p248_p9), %v472_v2, %v2568_v0  ;;  %v486_v7 = vsub.s32 (!%p248_p9), 0, %v2573_v3  ;;  %vm478_vm2 = vcmp.lt.s32.totalorder (!%p248_p9), %v464_v1, 0  ;;  %s2479_s15 = smov (!%p248_p9), 24   ;;  %s2480_s10 = smov (!%p248_p9), 8  }
  0x12   : > { %v493_v15 = vsub.s32 (!%p248_p9), 0, %v2579_v4  ;;  %vm485_vm15 = vcmp.lt.s32.totalorder (!%p248_p9), %v2573_v3, 0  ;;  %s2483_s9 = smov (!%p248_p9), 32   ;;  %s321_s16 = sadd.s32 (!%p248_p9), 8, %s2564_s30 }
  0x13   : > { %v1920_v8 = vmin.u32 (!%p248_p9), %v479_v5, %v464_v1  ;;  %v475_v9 = vand.u32 (!%p248_p9), 15, %v2582_v6  ;;  %v2623_v25 = vmin.u32 (!%p248_p9), %v486_v7, %v2573_v3  ;;  %v2406_v7 = vld [vmem:[%s3539_s3 + $0x10] sm:$0xff] (!%p248_p9)   ;;  %1992 = vmatpush3.bf16.msra.mxu0 (!%p248_p9), %v2405_v58  ;;  %2030 = vmatpush3.bf16.msra.mxu1 (!%p248_p9), %v2405_v58  ;;  %p3135_p13 = scmp.lt.s32.totalorder (!%p248_p9), %s321_s16, 31 }
  0x14   : > { %v2682_v57 = vmin.u32 (!%p248_p9), %v493_v15, %v2579_v4  ;;  %1993 = vmatprep.subr.bf16.mxu0 (!%p248_p9), %v2406_v7  ;;  %2023 = vmatprep.subr.bf16.mxu1 (!%p248_p9), %v2406_v7 }
  0x15   : > { %s2576_s6 = scalar_select %p314_p10, %s2564_s30, 31  ;;  %v482_v20 = vand.u32 15, %v1920_v8  ;;  %v2618_v24 = vsub.s32 0, %v475_v9  ;;  %v489_v47 = vand.u32 15, %v2623_v25 }
  0x16   : > { %s303_s12 = scalar_select %p302_p11, %s2585_s7, 0 }
  0x17   : > { %s1970_s8 = sshll.u32 %s2576_s6, 4  ;;  %v483_v29 = vsub.s32 0, %v482_v20  ;;  %1994 = vmatpush3.bf16.msra.mxu0 %v2406_v7  ;;  %2031 = vmatpush3.bf16.msra.mxu1 %v2406_v7  ;;  %s2482_s7 = smov 28  }
  0x18   : > { %s2595_s11 = scalar_lea.vmem %s3537_s1, %s1970_s8  ;;  %s3552_s12 = smov (!%p1899_p12, %s303_s12), 31 }
  0x19   : > { %v345_v12 = vld [vmem:[%s2595_s11 + $0x10] sm:$0xff]  ;;  %v346_v13 = vld [vmem:[%s2595_s11 + $0x18] sm:$0xff]  ;;  %v343_v14 = vld [vmem:[%s2595_s11] sm:$0xff]  ;;  %s1969_s13 = sshll.u32 %s3552_s12, 4  ;;  %v484_v34 = vsel %vm478_vm2, %v483_v29, %v482_v20  ;;  %s2481_s12 = smov 4   ;;  %vm492_vm2 = vcmp.lt.s32.totalorder %v2579_v4, 0 }
  0x1a   : > { %v388_v16 = vrot.slane %v345_v12, 7  ;;  %v389_v17 = vrot.slane %v346_v13, 7  ;;  %v344_v18 = vld [vmem:[%s2595_s11 + $0x8] sm:$0xff]  ;;  %v385_v19 = vrot.slane %v343_v14, 7  ;;  %v2612_v21 = vld [vmem:[%s2595_s11 + $0x20] sm:$0xff]  ;;  %vm528_vm5 = vcmp.ne.s32.totalorder %v484_v34, 0  ;;  %s2660_s17 = scalar_lea.vmem %s3536_s0, %s1969_s13 }
  0x1b   : > { %v386_v22 = vrot.slane %v344_v18, 7  ;;  %v391_v23 = vrot.slane %v2612_v21, 7  ;;  %vm536_vm6 = vcmp.lt.s32.totalorder %v484_v34, 0  ;;  %v552_v38 = vadd.s32 16, %v484_v34  ;;  %v2674_v53 = vld [vmem:[%s2595_s11 + $0x28] sm:$0xff]  ;;  %v341_v56 = vld [vmem:[%s2660_s17] sm:$0xff] }
  0x1c   : > { %v2626_v26 = vsel %vm381_vm0, %v388_v16, %v389_v17  ;;  %v2629_v27 = vsel %vm381_vm0, 0.0, %v388_v16  ;;  %v2632_v28 = vsel %vm381_vm0, 0.0, %v385_v19  ;;  %v2640_v32 = vsel %vm381_vm0, %v389_v17, 0.0  ;;  %vm544_vm7 = vmand %vm536_vm6, %vm528_vm5  ;;  %v342_v13 = vld [vmem:[%s2660_s17 + $0x8] sm:$0xff]  ;;  %s2478_s13 = smov 20   ;;  %s3554_s16 = smov (!%p3135_p13, %s321_s16), 31 }
  0x1d   : > { %v2089_v30 = vpack.i.bf16 %v2626_v26, %v2629_v27  ;;  %v2637_v31 = vsel %vm381_vm0, %v385_v19, %v386_v22  ;;  %v934_v33 = vrot.slane %v2629_v27, 1  ;;  %v935_v36 = vrot.slane %v2626_v26, 1  ;;  %s3556_s16 = smov (!%p3135_p13, %s3554_s16), 31  ;;  %s297_s6 = sand.u32 1, %s2466_s19  }
  0x1e   : > { %v2084_v35 = vpack.i.bf16 %v2637_v31, %v2632_v28  ;;  %v937_v37 = vrot.slane %v2640_v32, 1  ;;  %v2650_v39 = vsel %vm381_vm0, %v386_v22, 0.0  ;;  %v929_v42 = vrot.slane %v2632_v28, 1  ;;  %s1971_s30 = sshll.u32 %s3556_s16, 4 }
  0x1f   : > { %2090 = vrot.lane.b32.xlu1 %v2089_v30, %s2476_s14  ;;  %v936_v40 = vsel %vm687_vm1, %v934_v33, %v935_v36  ;;  %v930_v43 = vrot.slane %v2637_v31, 1  ;;  %v932_v45 = vrot.slane %v2650_v39, 1  ;;  %v1022_v46 = vrot.slane %v2629_v27, 2  ;;  %s328_s25 = scalar_lea.vmem %s3538_s2, %s1971_s30  ;;  %s2484_s30 = smov [#allocation2]  }
  0x20   : > { %2085 = vrot.lane.b32.xlu0 %v2084_v35, %s2476_s14  ;;  %v938_v41 = vsel %vm687_vm1, %v935_v36, %v937_v37  ;;  %v2668_v49 = vsel %vm544_vm7, %v552_v38, %v484_v34  ;;  %v1023_v51 = vrot.slane %v2626_v26, 2  ;;  %v1025_v52 = vrot.slane %v2640_v32, 2  ;;  %v2407_v35 = vld [vmem:[%s3539_s3 + $0x18] sm:$0xff]  }
  0x21   : > { %v2099_v44 = vpack.i.bf16 %v938_v41, %v936_v40  ;;  %v931_v50 = vsel %vm687_vm1, %v929_v42, %v930_v43  ;;  %vm568_vm8 = vcmp.ne.s32.totalorder %v2668_v49, 0  ;;  %v933_v54 = vsel %vm687_vm1, %v930_v43, %v932_v45  ;;  %1995 = vmatprep.subr.bf16.mxu0 %v2407_v35  ;;  %2024 = vmatprep.subr.bf16.mxu1 %v2407_v35 }
  0x22   : > { %v1017_v55 = vrot.slane %v2632_v28, 2  ;;  %v2094_v59 = vpack.i.bf16 %v933_v54, %v931_v50  ;;  %v1024_v60 = vsel %vm776_vm3, %v1022_v46, %v1023_v51  ;;  %v1026_v61 = vsel %vm776_vm3, %v1023_v51, %v1025_v52  ;;  %v2408_v52 = vld [vmem:[%s3539_s3 + $0x20] sm:$0xff]   ;;  %1996 = vmatpush3.bf16.msra.mxu0 %v2407_v35  ;;  %2032 = vmatpush3.bf16.msra.mxu1 %v2407_v35 }
  0x23   : > { %2100 = vrot.lane.b32.xlu1 %v2099_v44, %s2477_s26  ;;  %v1018_v62 = vrot.slane %v2637_v31, 2  ;;  %v2109_v63 = vpack.i.bf16 %v1026_v61, %v1024_v60  ;;  %v1020_v1 = vrot.slane %v2650_v39, 2  ;;  %v392_v2 = vrot.slane %v2674_v53, 7  ;;  %1997 = vmatprep.subr.bf16.mxu0 %v2408_v52 }
  0x24   : > { %v2695_v5 = vsel %vm381_vm0, 0.0, %v391_v23  ;;  %2095 = vrot.lane.b32.xlu0 %v2094_v59, %s2477_s26  ;;  %vm576_vm9 = vcmp.ne.s32.totalorder %v2668_v49, 15  ;;  %v477_v12 = vsel %vm471_vm4, %v2618_v24, %v475_v9  ;;  %v382_v14 = vrot.slane %v341_v56, 7  ;;  %2025 = vmatprep.subr.bf16.mxu1 %v2408_v52 }
  0x25   : > { %v1019_v8 = vsel %vm776_vm3, %v1017_v55, %v1018_v62  ;;  %v1021_v15 = vsel %vm776_vm3, %v1018_v62, %v1020_v1  ;;  %v2716_v16 = vsel %vm381_vm0, %v391_v23, %v392_v2  ;;  %v2721_v6 = vsel %vm576_vm9, %v2695_v5, 0.0 }
  0x26   : > { %vm527_vm10 = vcmp.ne.s32.totalorder %v477_v12, 0  ;;  %v2726_v9 = vsel %vm568_vm8, %v2632_v28, 0.0  ;;  %v2731_v17 = vsel %vm568_vm8, %v2637_v31, 0.0  ;;  %v2104_v18 = vpack.i.bf16 %v1021_v15, %v1019_v8  ;;  %1998 = vmatpush3.bf16.msra.mxu0 %v2408_v52  ;;  %2033 = vmatpush3.bf16.msra.mxu1 %v2408_v52 }
  0x27   : > { %2110 = vrot.lane.b32.xlu1 %v2109_v63, %s2478_s13  ;;  %v2736_v19 = vsel %vm576_vm9, %v2716_v16, 0.0  ;;  %v1182_v20 = vrot.slane %v2721_v6, 1  ;;  %v1270_v21 = vrot.slane %v2721_v6, 2  ;;  %vm535_vm11 = vcmp.lt.s32.totalorder %v477_v12, 0 }
  0x28   : > { %v2119_v22 = vpack.i.bf16 %v2736_v19, %v2721_v6  ;;  %2105 = vrot.lane.b32.xlu0 %v2104_v18, %s2478_s13  ;;  %v1183_v23 = vrot.slane %v2736_v19, 1  ;;  %vm543_vm12 = vmand %vm535_vm11, %vm527_vm10  ;;  %v551_v24 = vadd.s32 16, %v477_v12  ;;  %v383_v28 = vrot.slane %v342_v13, 7  ;;  %v2409_v18 = vld [vmem:[%s3539_s3 + $0x28] sm:$0xff]  }
  0x29   : > { %v604_v29 = vsel %vm568_vm8, %v2650_v39, 0.0  ;;  %v442_v30 = vsel %vm381_vm0, 0.0, %v382_v14  ;;  %v782_v31 = vrot.slane %v2726_v9, 2  ;;  %v783_v33 = vrot.slane %v2731_v17, 2  ;;  %1999 = vmatprep.subr.bf16.mxu0 %v2409_v18  ;;  %2026 = vmatprep.subr.bf16.mxu1 %v2409_v18 }
  0x2a   : > { %v785_v34 = vrot.slane %v604_v29, 2  ;;  %v1271_v36 = vrot.slane %v2736_v19, 2  ;;  %v559_v37 = vsel %vm543_vm12, %v551_v24, %v477_v12  ;;  %v384_v38 = vsel %vm381_vm0, %v382_v14, %v383_v28  ;;  %2000 = vmatpush3.bf16.msra.mxu0 %v2409_v18  ;;  %2034 = vmatpush3.bf16.msra.mxu1 %v2409_v18 }
  0x2b   : > { %2120 = vrot.lane.b32.xlu1 %v2119_v22, %s2479_s15  ;;  %v693_v39 = vrot.slane %v2726_v9, 1  ;;  %vm567_vm13 = vcmp.ne.s32.totalorder %v559_v37, 0  ;;  %vm575_vm14 = vcmp.ne.s32.totalorder %v559_v37, 15  ;;  %v452_v40 = vsel %vm381_vm0, %v383_v28, 0.0 }
  0x2c   : > { %v694_v41 = vrot.slane %v2731_v17, 1  ;;  %v2762_v42 = vsel %vm575_vm14, %v2629_v27, 0.0  ;;  %v2766_v43 = vsel %vm575_vm14, %v2626_v26, 0.0  ;;  %v2769_v44 = vsel %vm567_vm13, %v442_v30, 0.0 }
  0x2d   : > { %v2772_v45 = vsel %vm567_vm13, %v384_v38, 0.0  ;;  %v1177_v46 = vrot.slane %v2762_v42, 1  ;;  %v2114_v48 = vpack.i.bf16 %v2766_v43, %v2762_v42  ;;  %v784_v50 = vsel %vm776_vm3, %v782_v31, %v783_v33 }
  0x2e   : > { %v786_v51 = vsel %vm776_vm3, %v783_v33, %v785_v34  ;;  %v1265_v54 = vrot.slane %v2762_v42, 2  ;;  %v601_v55 = vsel %vm567_vm13, %v452_v40, 0.0  ;;  %v777_v56 = vrot.slane %v2769_v44, 2 }
  0x2f   : > { %v778_v58 = vrot.slane %v2772_v45, 2  ;;  %2115 = vrot.lane.b32.xlu0 %v2114_v48, %s2479_s15  ;;  %v780_v59 = vrot.slane %v601_v55, 2  ;;  %v688_v60 = vrot.slane %v2769_v44, 1  ;;  %v689_v61 = vrot.slane %v2772_v45, 1  ;;  %v350_v48 = vld [vmem:[%s2595_s11 + $0x38] sm:$0xff] }
  0x30   : > { %v691_v62 = vrot.slane %v601_v55, 1  ;;  %v1178_v63 = vrot.slane %v2766_v43, 1  ;;  %v695_v7 = vsel %vm687_vm1, %v693_v39, %v694_v41  ;;  %v696_v8 = vrot.slane %v604_v29, 1 }
  0x31   : > { %v779_v1 = vsel %vm776_vm3, %v777_v56, %v778_v58  ;;  %v781_v12 = vsel %vm776_vm3, %v778_v58, %v780_v59  ;;  %v690_v13 = vsel %vm687_vm1, %v688_v60, %v689_v61  ;;  %v2798_v15 = vsel %vm381_vm0, %v392_v2, 0.0  ;;  %v2411_v56 = vld [vmem:[%s3539_s3 + $0x38] sm:$0xff]  }
  0x32   : > { %v692_v14 = vsel %vm687_vm1, %v689_v61, %v691_v62  ;;  %v2129_v22 = vpack.i.bf16 %v781_v12, %v779_v1  ;;  %v697_v28 = vsel %vm687_vm1, %v694_v41, %v696_v8  ;;  %v644_v29 = vsel %vm576_vm9, %v2798_v15, 0.0  ;;  %v2410_v41 = vld [vmem:[%s3539_s3 + $0x30] sm:$0xff]  }
  0x33   : > { %v2124_v24 = vpack.i.bf16 %v692_v14, %v690_v13  ;;  %v1266_v30 = vrot.slane %v2766_v43, 2  ;;  %v2144_v53 = vpack.i.bf16 %v786_v51, %v784_v50  ;;  %v1185_v31 = vrot.slane %v644_v29, 1  ;;  %v349_v43 = vld [vmem:[%s2595_s11 + $0x30] sm:$0xff]  ;;  %2001 = vmatprep.subr.bf16.mxu0 %v2410_v41  ;;  %2027 = vmatprep.subr.bf16.mxu1 %v2410_v41 }
  0x34   : > { %v641_v2 = vsel %vm575_vm14, %v2640_v32, 0.0  ;;  %2130 = vrot.lane.b32.xlu1 %v2129_v22, %s2480_s10  ;;  %v2134_v33 = vpack.i.bf16 %v697_v28, %v695_v7  ;;  %v1184_v49 = vsel %vm687_vm1, %v1182_v20, %v1183_v23  ;;  %v490_v35 = vsub.s32 0, %v489_v47  ;;  %2002 = vmatpush3.bf16.msra.mxu0 %v2410_v41 }
  0x35   : > { %2125 = vrot.lane.b32.xlu0 %v2124_v24, %s2481_s12  ;;  %v1180_v34 = vrot.slane %v641_v2, 1  ;;  %v1186_v37 = vsel %vm687_vm1, %v1183_v23, %v1185_v31  ;;  %v1179_v38 = vsel %vm687_vm1, %v1177_v46, %v1178_v63  ;;  %v1268_v39 = vrot.slane %v641_v2, 2  ;;  %2003 = vmatprep.subr.bf16.mxu0 %v2411_v56 }
  0x36   : > { %v496_v40 = vand.u32 15, %v2682_v57  ;;  %v491_v42 = vsel %vm485_vm15, %v490_v35, %v489_v47  ;;  %v1273_v23 = vrot.slane %v644_v29, 2  ;;  %v1267_v46 = vsel %vm776_vm3, %v1265_v54, %v1266_v30  ;;  %2035 = vmatpush3.bf16.msra.mxu1 %v2410_v41 }
  0x37   : > { %v1181_v20 = vsel %vm687_vm1, %v1178_v63, %v1180_v34  ;;  %vm529_vm4 = vcmp.ne.s32.totalorder %v491_v42, 0  ;;  %vm537_vm5 = vcmp.lt.s32.totalorder %v491_v42, 0  ;;  %v553_v57 = vadd.s32 16, %v491_v42  ;;  %2028 = vmatprep.subr.bf16.mxu1 %v2411_v56 }
  0x38   : > { %2145 = vrot.lane.b32.xlu1 %v2144_v53, %s2480_s10  ;;  %v2149_v25 = vpack.i.bf16 %v1186_v37, %v1184_v49  ;;  %v2139_v3 = vpack.i.bf16 %v1181_v20, %v1179_v38  ;;  %vm545_vm6 = vmand %vm537_vm5, %vm529_vm4  ;;  %v1269_v47 = vsel %vm776_vm3, %v1266_v30, %v1268_v39  ;;  %v497_v50 = vsub.s32 0, %v496_v40  ;;  %2004 = vmatpush3.bf16.msra.mxu0 %v2411_v56 }
  0x39   : > { %2135 = vrot.lane.b32.xlu0 %v2134_v33, %s2481_s12  ;;  %v2839_v51 = vsel %vm545_vm6, %v553_v57, %v491_v42  ;;  %v1272_v52 = vsel %vm776_vm3, %v1270_v21, %v1271_v36  ;;  %v1274_v54 = vsel %vm776_vm3, %v1271_v36, %v1273_v23  ;;  %v394_v55 = vrot.slane %v349_v43, 7 }
  0x3a   : > { %vm569_vm7 = vcmp.ne.s32.totalorder %v2839_v51, 0  ;;  %v2154_v58 = vpack.i.bf16 %v1269_v47, %v1267_v46  ;;  %v498_v59 = vsel %vm492_vm2, %v497_v50, %v496_v40  ;;  %v395_v60 = vrot.slane %v350_v48, 7  ;;  %2036 = vmatpush3.bf16.msra.mxu1 %v2411_v56  ;;  %v351_v48 = vld [vmem:[%s2595_s11 + $0x40] sm:$0xff]  ;;  %v352_v50 = vld [vmem:[%s2595_s11 + $0x48] sm:$0xff] }
  0x3b   : > { %v2856_v6 = vsel %vm569_vm7, %v2629_v27, 0.0  ;;  %v2859_v19 = vsel %vm569_vm7, %v2626_v26, 0.0  ;;  %v607_v21 = vsel %vm569_vm7, %v2640_v32, 0.0  ;;  %vm530_vm8 = vcmp.ne.s32.totalorder %v498_v59, 0 }
  0x3c   : > { %2150 = vrot.lane.b32.xlu1 %v2149_v25, %s2482_s7  ;;  %v698_v4 = vrot.slane %v2856_v6, 1  ;;  %v699_v36 = vrot.slane %v2859_v19, 1  ;;  %v701_v61 = vrot.slane %v607_v21, 1  ;;  %vm538_vm9 = vcmp.lt.s32.totalorder %v498_v59, 0 }
  0x3d   : > { %2140 = vrot.lane.b32.xlu0 %v2139_v3, %s2482_s7  ;;  %vm546_vm10 = vmand %vm538_vm9, %vm530_vm8  ;;  %v554_v27 = vadd.s32 16, %v498_v59  ;;  %v787_v26 = vrot.slane %v2856_v6, 2  ;;  %v788_v62 = vrot.slane %v2859_v19, 2  ;;  %v790_v32 = vrot.slane %v607_v21, 2 }
  0x3e   : > { %v700_v63 = vsel %vm687_vm1, %v698_v4, %v699_v36  ;;  %v702_v1 = vsel %vm687_vm1, %v699_v36, %v701_v61  ;;  %v2164_v7 = vpack.i.bf16 %v1274_v54, %v1272_v52  ;;  %v500_v8 = vsub.s32 0, %v2600_v10 }
  0x3f   : > { %v2159_v12 = vpack.i.bf16 %v702_v1, %v700_v63  ;;  %v2871_v13 = vsel %vm546_vm10, %v554_v27, %v498_v59  ;;  %v789_v14 = vsel %vm776_vm3, %v787_v26, %v788_v62  ;;  %v791_v18 = vsel %vm776_vm3, %v788_v62, %v790_v32 }
  0x40   : > { %vm570_vm11 = vcmp.ne.s32.totalorder %v2871_v13, 0  ;;  %v2878_v22 = vsel %vm381_vm0, %v394_v55, %v395_v60  ;;  %v2881_v24 = vsel %vm381_vm0, 0.0, %v394_v55  ;;  %v2884_v28 = vsel %vm381_vm0, %v395_v60, 0.0 }
  0x41   : > { %2155 = vrot.lane.b32.xlu0 %v2154_v58, %s2483_s9  ;;  %2160 = vrot.lane.b32.xlu1 %v2159_v12, %s2481_s12  ;;  %v2888_v29 = vsel %vm570_vm11, %v2695_v5, 0.0  ;;  %v2891_v30 = vsel %vm570_vm11, %v2716_v16, 0.0  ;;  %v610_v53 = vsel %vm570_vm11, %v2798_v15, 0.0  ;;  %v2174_v31 = vpack.i.bf16 %v791_v18, %v789_v14 }
  0x42   : > { %v703_v2 = vrot.slane %v2888_v29, 1  ;;  %v704_v33 = vrot.slane %v2891_v30, 1  ;;  %v706_v49 = vrot.slane %v610_v53, 1  ;;  %v792_v34 = vrot.slane %v2888_v29, 2 }
  0x43   : > { %v793_v35 = vrot.slane %v2891_v30, 2  ;;  %v795_v37 = vrot.slane %v610_v53, 2  ;;  %v944_v38 = vrot.slane %v2881_v24, 1  ;;  %v945_v39 = vrot.slane %v2878_v22, 1 }
  0x44   : > { %v705_v40 = vsel %vm687_vm1, %v703_v2, %v704_v33  ;;  %v707_v41 = vsel %vm687_vm1, %v704_v33, %v706_v49  ;;  %v939_v20 = vrot.slane %v2695_v5, 1  ;;  %v940_v42 = vrot.slane %v2716_v16, 1 }
  0x45   : > { %2165 = vrot.lane.b32.xlu0 %v2164_v7, %s2483_s9  ;;  %v2169_v23 = vpack.i.bf16 %v707_v41, %v705_v40  ;;  %v794_v43 = vsel %vm776_vm3, %v792_v34, %v793_v35  ;;  %v796_v57 = vsel %vm776_vm3, %v793_v35, %v795_v37  ;;  %v947_v46 = vrot.slane %v2884_v28, 1 }
  0x46   : > { %v2189_v25 = vpack.i.bf16 %v2878_v22, %v2881_v24  ;;  %v2184_v3 = vpack.i.bf16 %v2716_v16, %v2695_v5  ;;  %v942_v47 = vrot.slane %v2798_v15, 1  ;;  %v507_v52 = vsub.s32 0, %v2603_v11 }
  0x47   : > { %2170 = vrot.lane.b32.xlu1 %v2169_v23, %s2481_s12  ;;  %v2179_v54 = vpack.i.bf16 %v796_v57, %v794_v43  ;;  %v946_v55 = vsel %vm687_vm1, %v944_v38, %v945_v39  ;;  %v941_v56 = vsel %vm687_vm1, %v939_v20, %v940_v42  ;;  %v1027_v58 = vrot.slane %v2695_v5, 2 }
  0x48   : > { %v943_v59 = vsel %vm687_vm1, %v940_v42, %v942_v47  ;;  %v1028_v60 = vrot.slane %v2716_v16, 2  ;;  %v1030_v21 = vrot.slane %v2798_v15, 2  ;;  %v397_v4 = vrot.slane %v351_v48, 7 }
  0x49   : > { %2175 = vrot.lane.b32.xlu0 %v2174_v31, %s2480_s10  ;;  %v948_v36 = vsel %vm687_vm1, %v945_v39, %v947_v46  ;;  %v1032_v61 = vrot.slane %v2881_v24, 2  ;;  %v1033_v27 = vrot.slane %v2878_v22, 2  ;;  %v398_v26 = vrot.slane %v352_v50, 7 }
  0x4a   : > { %v2194_v62 = vpack.i.bf16 %v943_v59, %v941_v56  ;;  %v1035_v32 = vrot.slane %v2884_v28, 2  ;;  %v1029_v5 = vsel %vm776_vm3, %v1027_v58, %v1028_v60  ;;  %v2930_v63 = vsel %vm381_vm0, 0.0, %v397_v4 }
  0x4b   : > { %2180 = vrot.lane.b32.xlu1 %v2179_v54, %s2480_s10  ;;  %v1031_v16 = vsel %vm776_vm3, %v1028_v60, %v1030_v21  ;;  %v2935_v15 = vsel %vm381_vm0, %v397_v4, %v398_v26  ;;  %vm578_vm12 = vcmp.ne.s32.totalorder %v2871_v13, 15  ;;  %vm577_vm13 = vcmp.ne.s32.totalorder %v2839_v51, 15 }
  0x4c   : > { %v2943_v1 = vsel %vm578_vm12, %v2930_v63, 0.0  ;;  %v2948_v7 = vsel %vm578_vm12, %v2935_v15, 0.0  ;;  %v645_v12 = vsel %vm577_vm13, %v2881_v24, 0.0  ;;  %v646_v14 = vsel %vm577_vm13, %v2878_v22, 0.0 }
  0x4d   : > { %2185 = vrot.lane.b32.xlu0 %v2184_v3, %s2476_s14  ;;  %v2199_v18 = vpack.i.bf16 %v948_v36, %v946_v55  ;;  %v1034_v53 = vsel %vm776_vm3, %v1032_v61, %v1033_v27  ;;  %vm499_vm14 = vcmp.lt.s32.totalorder %v2600_v10, 0  ;;  %v1036_v31 = vsel %vm776_vm3, %v1033_v27, %v1035_v32  ;;  %v353_v61 = vld [vmem:[%s2595_s11 + $0x50] sm:$0xff] }
  0x4e   : > { %v2204_v2 = vpack.i.bf16 %v1031_v16, %v1029_v5  ;;  %v1192_v33 = vrot.slane %v2943_v1, 1  ;;  %v1280_v49 = vrot.slane %v2943_v1, 2  ;;  %v1193_v34 = vrot.slane %v2948_v7, 1 }
  0x4f   : > { %2190 = vrot.lane.b32.xlu1 %v2189_v25, %s2476_s14  ;;  %v1187_v35 = vrot.slane %v645_v12, 1  ;;  %v1188_v37 = vrot.slane %v646_v14, 1  ;;  %v2964_v38 = vsel %vm381_vm0, %v398_v26, 0.0  ;;  %v647_v40 = vsel %vm577_vm13, %v2884_v28, 0.0 }
  0x50   : > { %v650_v39 = vsel %vm578_vm12, %v2964_v38, 0.0  ;;  %v1923_v41 = vmin.u32 %v500_v8, %v2600_v10  ;;  %v1924_v20 = vmin.u32 %v507_v52, %v2603_v11  ;;  %v1281_v42 = vrot.slane %v2948_v7, 2 }
  0x51   : > { %2195 = vrot.lane.b32.xlu0 %v2194_v62, %s2477_s26  ;;  %v1275_v23 = vrot.slane %v645_v12, 2  ;;  %v1276_v43 = vrot.slane %v646_v14, 2  ;;  %v1190_v57 = vrot.slane %v647_v40, 1  ;;  %v1195_v46 = vrot.slane %v650_v39, 1  ;;  %v354_v62 = vld [vmem:[%s2595_s11 + $0x58] sm:$0xff] }
  0x52   : > { %v503_v48 = vand.u32 15, %v1923_v41  ;;  %v1278_v25 = vrot.slane %v647_v40, 2  ;;  %v510_v13 = vand.u32 15, %v1924_v20  ;;  %v2209_v3 = vpack.i.bf16 %v1036_v31, %v1034_v53 }
  0x53   : > { %2200 = vrot.lane.b32.xlu1 %v2199_v18, %s2477_s26  ;;  %v2219_v51 = vpack.i.bf16 %v2948_v7, %v2943_v1  ;;  %vm506_vm15 = vcmp.lt.s32.totalorder %v2603_v11, 0  ;;  %v1283_v8 = vrot.slane %v650_v39, 2  ;;  %v2214_v47 = vpack.i.bf16 %v646_v14, %v645_v12 }
  0x54   : > { %v1194_v50 = vsel %vm687_vm1, %v1192_v33, %v1193_v34  ;;  %v1189_v52 = vsel %vm687_vm1, %v1187_v35, %v1188_v37  ;;  %v504_v54 = vsub.s32 0, %v503_v48  ;;  %v1191_v55 = vsel %vm687_vm1, %v1188_v37, %v1190_v57 }
  0x55   : > { %2205 = vrot.lane.b32.xlu0 %v2204_v2, %s2478_s13  ;;  %v1277_v56 = vsel %vm776_vm3, %v1275_v23, %v1276_v43  ;;  %v511_v58 = vsub.s32 0, %v510_v13  ;;  %v2988_v59 = vsel %vm776_vm3, %v1280_v49, %v1281_v42  ;;  %v1196_v60 = vsel %vm687_vm1, %v1193_v34, %v1195_v46 }
  0x56   : > { %v505_v21 = vsel %vm499_vm14, %v504_v54, %v503_v48  ;;  %v1279_v4 = vsel %vm776_vm3, %v1276_v43, %v1278_v25  ;;  %v1284_v36 = vsel %vm776_vm3, %v1281_v42, %v1283_v8  ;;  %v2224_v32 = vpack.i.bf16 %v1191_v55, %v1189_v52 }
  0x57   : > { %2210 = vrot.lane.b32.xlu1 %v2209_v3, %s2478_s13  ;;  %vm531_vm2 = vcmp.ne.s32.totalorder %v505_v21, 0  ;;  %vm539_vm4 = vcmp.lt.s32.totalorder %v505_v21, 0  ;;  %v555_v27 = vadd.s32 16, %v505_v21  ;;  %v512_v26 = vsel %vm506_vm15, %v511_v58, %v510_v13 }
  0x58   : > { %vm547_vm5 = vmand %vm539_vm4, %vm531_vm2  ;;  %vm532_vm6 = vcmp.ne.s32.totalorder %v512_v26, 0  ;;  %vm540_vm7 = vcmp.lt.s32.totalorder %v512_v26, 0  ;;  %v556_v10 = vadd.s32 16, %v512_v26  ;;  %v2229_v5 = vpack.i.bf16 %v1196_v60, %v1194_v50  ;;  %v355_v60 = vld [vmem:[%s2595_s11 + $0x60] sm:$0xff] }
  0x59   : > { %2215 = vrot.lane.b32.xlu0 %v2214_v47, %s2479_s15  ;;  %v3001_v16 = vsel %vm547_vm5, %v555_v27, %v505_v21  ;;  %v2234_v1 = vpack.i.bf16 %v1279_v4, %v1277_v56  ;;  %vm548_vm8 = vmand %vm540_vm7, %vm532_vm6  ;;  %v400_v7 = vrot.slane %v353_v61, 7  ;;  %v2244_v11 = vpack.i.bf16 %v1284_v36, %v2988_v59  ;;  %v356_v61 = vld [vmem:[%s2595_s11 + $0x68] sm:$0xff] }
  0x5a   : > { %vm571_vm9 = vcmp.ne.s32.totalorder %v3001_v16, 0  ;;  %v3004_v12 = vsel %vm548_vm8, %v556_v10, %v512_v26  ;;  %v401_v14 = vrot.slane %v354_v62, 7  ;;  %v949_v55 = vrot.slane %v2930_v63, 1 }
  0x5b   : > { %2220 = vrot.lane.b32.xlu1 %v2219_v51, %s2479_s15  ;;  %v3009_v18 = vsel %vm571_vm9, %v2881_v24, 0.0  ;;  %v3012_v53 = vsel %vm571_vm9, %v2878_v22, 0.0  ;;  %v613_v31 = vsel %vm571_vm9, %v2884_v28, 0.0  ;;  %vm572_vm10 = vcmp.ne.s32.totalorder %v3004_v12, 0 }
  0x5c   : > { %v708_v2 = vrot.slane %v3009_v18, 1  ;;  %v709_v33 = vrot.slane %v3012_v53, 1  ;;  %v711_v49 = vrot.slane %v613_v31, 1  ;;  %v3020_v34 = vsel %vm572_vm10, %v2930_v63, 0.0 }
  0x5d   : > { %2225 = vrot.lane.b32.xlu0 %v2224_v32, %s2482_s7  ;;  %v3023_v24 = vsel %vm572_vm10, %v2935_v15, 0.0  ;;  %v616_v22 = vsel %vm572_vm10, %v2964_v38, 0.0  ;;  %v713_v35 = vrot.slane %v3020_v34, 1  ;;  %v802_v28 = vrot.slane %v3020_v34, 2 }
  0x5e   : > { %v710_v37 = vsel %vm687_vm1, %v708_v2, %v709_v33  ;;  %v712_v39 = vsel %vm687_vm1, %v709_v33, %v711_v49  ;;  %v714_v40 = vrot.slane %v3023_v24, 1  ;;  %v716_v41 = vrot.slane %v616_v22, 1 }
  0x5f   : > { %2230 = vrot.lane.b32.xlu1 %v2229_v5, %s2482_s7  ;;  %v2239_v20 = vpack.i.bf16 %v712_v39, %v710_v37  ;;  %v803_v42 = vrot.slane %v3023_v24, 2  ;;  %v805_v23 = vrot.slane %v616_v22, 2  ;;  %v797_v43 = vrot.slane %v3009_v18, 2 }
  0x60   : > { %v715_v57 = vsel %vm687_vm1, %v713_v35, %v714_v40  ;;  %v717_v46 = vsel %vm687_vm1, %v714_v40, %v716_v41  ;;  %v798_v48 = vrot.slane %v3012_v53, 2  ;;  %v800_v25 = vrot.slane %v613_v31, 2 }
  0x61   : > { %2235 = vrot.lane.b32.xlu0 %v2234_v1, %s2483_s9  ;;  %v3039_v13 = vsel %vm381_vm0, %v400_v7, %v401_v14  ;;  %v3042_v3 = vsel %vm381_vm0, 0.0, %v400_v7  ;;  %v2249_v51 = vpack.i.bf16 %v717_v46, %v715_v57  ;;  %v3047_v50 = vsel %vm381_vm0, %v401_v14, 0.0 }
  0x62   : > { %v799_v8 = vsel %vm776_vm3, %v797_v43, %v798_v48  ;;  %v801_v47 = vsel %vm776_vm3, %v798_v48, %v800_v25  ;;  %v804_v52 = vsel %vm776_vm3, %v802_v28, %v803_v42  ;;  %v806_v54 = vsel %vm776_vm3, %v803_v42, %v805_v23 }
  0x63   : > { %2240 = vrot.lane.b32.xlu1 %v2239_v20, %s2481_s12  ;;  %v950_v56 = vrot.slane %v2935_v15, 1  ;;  %v2254_v58 = vpack.i.bf16 %v801_v47, %v799_v8  ;;  %v952_v59 = vrot.slane %v2964_v38, 1  ;;  %v954_v21 = vrot.slane %v3042_v3, 1 }
  0x64   : > { %v955_v4 = vrot.slane %v3039_v13, 1  ;;  %v957_v36 = vrot.slane %v3047_v50, 1  ;;  %v2259_v27 = vpack.i.bf16 %v806_v54, %v804_v52  ;;  %v1037_v62 = vrot.slane %v2930_v63, 2 }
  0x65   : > { %2245 = vrot.lane.b32.xlu0 %v2244_v11, %s2483_s9  ;;  %v951_v26 = vsel %vm687_vm1, %v949_v55, %v950_v56  ;;  %v3064_v32 = vadd.s32 6, %v2568_v0  ;;  %v953_v10 = vsel %vm687_vm1, %v950_v56, %v952_v59  ;;  %v1038_v5 = vrot.slane %v2935_v15, 2 }
  0x66   : > { %v1040_v1 = vrot.slane %v2964_v38, 2  ;;  %v403_v7 = vrot.slane %v355_v60, 7  ;;  %v2269_v11 = vpack.i.bf16 %v3039_v13, %v3042_v3  ;;  %v2264_v14 = vpack.i.bf16 %v2935_v15, %v2930_v63 }
  0x67   : > { %2250 = vrot.lane.b32.xlu1 %v2249_v51, %s2481_s12  ;;  %v404_v31 = vrot.slane %v356_v61, 7  ;;  %v956_v2 = vsel %vm687_vm1, %v954_v21, %v955_v4  ;;  %v958_v33 = vsel %vm687_vm1, %v955_v4, %v957_v36  ;;  %v1042_v49 = vrot.slane %v3042_v3, 2 }
  0x68   : > { %vm579_vm11 = vcmp.ne.s32.totalorder %v3001_v16, 15  ;;  %v2274_v22 = vpack.i.bf16 %v953_v10, %v951_v26  ;;  %v1043_v38 = vrot.slane %v3039_v13, 2  ;;  %v1045_v35 = vrot.slane %v3047_v50, 2 }
  0x69   : > { %2255 = vrot.lane.b32.xlu0 %v2254_v58, %s2480_s10  ;;  %v514_v28 = vsub.s32 0, %v3064_v32  ;;  %v1039_v63 = vsel %vm776_vm3, %v1037_v62, %v1038_v5  ;;  %v1041_v15 = vsel %vm776_vm3, %v1038_v5, %v1040_v1  ;;  %v3086_v37 = vsel %vm381_vm0, 0.0, %v403_v7 }
  0x6a   : > { %vm580_vm12 = vcmp.ne.s32.totalorder %v3004_v12, 15  ;;  %v3091_v39 = vsel %vm381_vm0, %v403_v7, %v404_v31  ;;  %v651_v40 = vsel %vm579_vm11, %v3042_v3, 0.0  ;;  %v652_v41 = vsel %vm579_vm11, %v3039_v13, 0.0 }
  0x6b   : > { %2260 = vrot.lane.b32.xlu1 %v2259_v27, %s2480_s10  ;;  %v470_v20 = vadd.s32 7, %v2568_v0  ;;  %v2279_v42 = vpack.i.bf16 %v958_v33, %v956_v2  ;;  %v3101_v23 = vsel %vm381_vm0, %v404_v31, 0.0  ;;  %v653_v43 = vsel %vm579_vm11, %v3047_v50, 0.0 }
  0x6c   : > { %v1044_v57 = vsel %vm776_vm3, %v1042_v49, %v1043_v38  ;;  %v1046_v46 = vsel %vm776_vm3, %v1043_v38, %v1045_v35  ;;  %v3111_v48 = vsel %vm580_vm12, %v3086_v37, 0.0  ;;  %v1925_v0 = vmin.u32 %v514_v28, %v3064_v32 }
  0x6d   : > { %2265 = vrot.lane.b32.xlu0 %v2264_v14, %s2476_s14  ;;  %v2284_v25 = vpack.i.bf16 %v1041_v15, %v1039_v63  ;;  %v3118_v16 = vsel %vm580_vm12, %v3091_v39, 0.0  ;;  %v1197_v51 = vrot.slane %v651_v40, 1  ;;  %v1198_v8 = vrot.slane %v652_v41, 1 }
  0x6e   : > { %v656_v47 = vsel %vm580_vm12, %v3101_v23, 0.0  ;;  %v1200_v52 = vrot.slane %v653_v43, 1  ;;  %v517_v54 = vand.u32 15, %v1925_v0  ;;  %v521_v55 = vsub.s32 0, %v470_v20 }
  0x6f   : > { %2270 = vrot.lane.b32.xlu1 %v2269_v11, %s2476_s14  ;;  %v2289_v56 = vpack.i.bf16 %v1046_v46, %v1044_v57  ;;  %v1202_v58 = vrot.slane %v3111_v48, 1  ;;  %v1290_v59 = vrot.slane %v3111_v48, 2  ;;  %vm513_vm13 = vcmp.lt.s32.totalorder %v3064_v32, 0  ;;  %v357_v46 = vld [vmem:[%s2595_s11 + $0x70] sm:$0xff] }
  0x70   : > { %v1203_v60 = vrot.slane %v3118_v16, 1  ;;  %v1285_v21 = vrot.slane %v651_v40, 2  ;;  %v518_v4 = vsub.s32 0, %v517_v54  ;;  %v1926_v36 = vmin.u32 %v521_v55, %v470_v20 }
  0x71   : > { %2275 = vrot.lane.b32.xlu0 %v2274_v22, %s2477_s26  ;;  %v2294_v12 = vpack.i.bf16 %v652_v41, %v651_v40  ;;  %v1286_v61 = vrot.slane %v652_v41, 2  ;;  %v1205_v27 = vrot.slane %v656_v47, 1  ;;  %v1199_v26 = vsel %vm687_vm1, %v1197_v51, %v1198_v8 }
  0x72   : > { %v1201_v62 = vsel %vm687_vm1, %v1198_v8, %v1200_v52  ;;  %v519_v10 = vsel %vm513_vm13, %v518_v4, %v517_v54  ;;  %v1288_v32 = vrot.slane %v653_v43, 2  ;;  %v524_v5 = vand.u32 15, %v1926_v36 }
  0x73   : > { %2280 = vrot.lane.b32.xlu1 %v2279_v42, %s2477_s26  ;;  %vm533_vm14 = vcmp.ne.s32.totalorder %v519_v10, 0  ;;  %vm541_vm15 = vcmp.lt.s32.totalorder %v519_v10, 0  ;;  %v557_v1 = vadd.s32 16, %v519_v10  ;;  %vm520_vm2 = vcmp.lt.s32.totalorder %v470_v20, 0 }
  0x74   : > { %v2299_v7 = vpack.i.bf16 %v3118_v16, %v3111_v48  ;;  %v1291_v11 = vrot.slane %v3118_v16, 2  ;;  %v1204_v14 = vsel %vm687_vm1, %v1202_v58, %v1203_v60  ;;  %vm549_vm4 = vmand %vm541_vm15, %vm533_vm14  ;;  %v525_v31 = vsub.s32 0, %v524_v5 }
  0x75   : > { %2285 = vrot.lane.b32.xlu0 %v2284_v25, %s2478_s13  ;;  %v1206_v2 = vsel %vm687_vm1, %v1203_v60, %v1205_v27  ;;  %v3145_v33 = vsel %vm549_vm4, %v557_v1, %v519_v10  ;;  %v1287_v49 = vsel %vm776_vm3, %v1285_v21, %v1286_v61  ;;  %v1293_v22 = vrot.slane %v656_v47, 2 }
  0x76   : > { %v2304_v38 = vpack.i.bf16 %v1201_v62, %v1199_v26  ;;  %vm573_vm5 = vcmp.ne.s32.totalorder %v3145_v33, 0  ;;  %v1289_v35 = vsel %vm776_vm3, %v1286_v61, %v1288_v32  ;;  %v526_v28 = vsel %vm520_vm2, %v525_v31, %v524_v5 }
  0x77   : > { %2290 = vrot.lane.b32.xlu1 %v2289_v56, %s2478_s13  ;;  %v3158_v63 = vsel %vm573_vm5, %v3042_v3, 0.0  ;;  %v3161_v15 = vsel %vm573_vm5, %v3039_v13, 0.0  ;;  %v619_v40 = vsel %vm573_vm5, %v3047_v50, 0.0  ;;  %vm534_vm6 = vcmp.ne.s32.totalorder %v526_v28, 0  ;;  %v358_v50 = vld [vmem:[%s2595_s11 + $0x78] sm:$0xff]  ;;  %s2416_s11 = sshll.u32 %s2484_s30, 4  ;;  %s2417_s11 = int_to_ptr.vmem [resolvable:$false] %s2416_s11 }
  0x78   : > { %v718_v41 = vrot.slane %v3158_v63, 1  ;;  %v719_v20 = vrot.slane %v3161_v15, 1  ;;  %v721_v42 = vrot.slane %v619_v40, 1  ;;  %vm542_vm7 = vcmp.lt.s32.totalorder %v526_v28, 0  ;;  %s2418_s23 = scalar_lea.vmem %s2417_s11, 256 }
  0x79   : > { %2295 = vrot.lane.b32.xlu0 %v2294_v12, %s2479_s15  ;;  %v2309_v43 = vpack.i.bf16 %v1206_v2, %v1204_v14  ;;  %vm550_vm8 = vmand %vm542_vm7, %vm534_vm6  ;;  %v558_v3 = vadd.s32 16, %v526_v28  ;;  %v1292_v57 = vsel %vm776_vm3, %v1290_v59, %v1291_v11  ;;  %v1294_v13 = vsel %vm776_vm3, %v1291_v11, %v1293_v22 }
  0x7a   : > { %v720_v48 = vsel %vm687_vm1, %v718_v41, %v719_v20  ;;  %v722_v0 = vsel %vm687_vm1, %v719_v20, %v721_v42  ;;  %v2314_v25 = vpack.i.bf16 %v1289_v35, %v1287_v49  ;;  %v807_v51 = vrot.slane %v3158_v63, 2  ;;  %v359_v35 = vld [vmem:[%s328_s25] sm:$0xff] }
  0x7b   : > { %2300 = vrot.lane.b32.xlu1 %v2299_v7, %s2479_s15  ;;  %v3177_v16 = vsel %vm550_vm8, %v558_v3, %v526_v28  ;;  %v808_v8 = vrot.slane %v3161_v15, 2  ;;  %v810_v47 = vrot.slane %v619_v40, 2  ;;  %v2324_v52 = vpack.i.bf16 %v1294_v13, %v1292_v57  ;;  %v360_v28 = vld [vmem:[%s328_s25 + $0x8] sm:$0xff] }
  0x7c   : > { %vm574_vm9 = vcmp.ne.s32.totalorder %v3177_v16, 0  ;;  %v406_v54 = vrot.slane %v357_v46, 7  ;;  %v407_v55 = vrot.slane %v358_v50, 7  ;;  %v2319_v56 = vpack.i.bf16 %v722_v0, %v720_v48 }
  0x7d   : > { %2305 = vrot.lane.b32.xlu0 %v2304_v38, %s2482_s7  ;;  %v3184_v58 = vsel %vm574_vm9, %v3086_v37, 0.0  ;;  %v3187_v59 = vsel %vm574_vm9, %v3091_v39, 0.0  ;;  %v622_v60 = vsel %vm574_vm9, %v3101_v23, 0.0  ;;  %v809_v26 = vsel %vm776_vm3, %v807_v51, %v808_v8 }
  0x7e   : > { %v723_v21 = vrot.slane %v3184_v58, 1  ;;  %v724_v4 = vrot.slane %v3187_v59, 1  ;;  %v726_v36 = vrot.slane %v622_v60, 1  ;;  %v812_v12 = vrot.slane %v3184_v58, 2 }
  0x7f   : > { %2310 = vrot.lane.b32.xlu1 %v2309_v43, %s2482_s7  ;;  %v813_v61 = vrot.slane %v3187_v59, 2  ;;  %v815_v27 = vrot.slane %v622_v60, 2  ;;  %v811_v62 = vsel %vm776_vm3, %v808_v8, %v810_v47  ;;  %v408_v1 = vsel %vm381_vm0, %v406_v54, %v407_v55 }
  0x80   : > { %v725_v10 = vsel %vm687_vm1, %v723_v21, %v724_v4  ;;  %v727_v32 = vsel %vm687_vm1, %v724_v4, %v726_v36  ;;  %v959_v7 = vrot.slane %v3086_v37, 1  ;;  %v960_v11 = vrot.slane %v3091_v39, 1 }
  0x81   : > { %2315 = vrot.lane.b32.xlu0 %v2314_v25, %s2483_s9  ;;  %v2329_v5 = vpack.i.bf16 %v727_v32, %v725_v10  ;;  %v814_v14 = vsel %vm776_vm3, %v812_v12, %v813_v61  ;;  %v816_v31 = vsel %vm776_vm3, %v813_v61, %v815_v27  ;;  %v2334_v2 = vpack.i.bf16 %v811_v62, %v809_v26 }
  0x82   : > { %v450_v49 = vsel %vm381_vm0, 0.0, %v406_v54  ;;  %v460_v22 = vsel %vm381_vm0, %v407_v55, 0.0  ;;  %v962_v38 = vrot.slane %v3101_v23, 1  ;;  %v2339_v40 = vpack.i.bf16 %v816_v31, %v814_v14 }
  0x83   : > { %2320 = vrot.lane.b32.xlu1 %v2319_v56, %s2481_s12  ;;  %v2344_v41 = vpack.i.bf16 %v3091_v39, %v3086_v37  ;;  %v964_v20 = vrot.slane %v450_v49, 1  ;;  %v965_v42 = vrot.slane %v408_v1, 1  ;;  %v967_v43 = vrot.slane %v460_v22, 1 }
  0x84   : > { %v961_v3 = vsel %vm687_vm1, %v959_v7, %v960_v11  ;;  %v1047_v57 = vrot.slane %v3086_v37, 2  ;;  %v1048_v13 = vrot.slane %v3091_v39, 2  ;;  %v963_v46 = vsel %vm687_vm1, %v960_v11, %v962_v38 }
  0x85   : > { %2325 = vrot.lane.b32.xlu0 %v2324_v52, %s2483_s9  ;;  %v1050_v50 = vrot.slane %v3101_v23, 2  ;;  %v409_v48 = vrot.slane %v359_v35, 7  ;;  %v410_v0 = vrot.slane %v360_v28, 7  ;;  %v2349_v25 = vpack.i.bf16 %v408_v1, %v450_v49 }
  0x86   : > { %v966_v51 = vsel %vm687_vm1, %v964_v20, %v965_v42  ;;  %v1052_v8 = vrot.slane %v450_v49, 2  ;;  %v1053_v47 = vrot.slane %v408_v1, 2  ;;  %vm581_vm10 = vcmp.ne.s32.totalorder %v3145_v33, 15 }
  0x87   : > { %2330 = vrot.lane.b32.xlu1 %v2329_v5, %s2481_s12  ;;  %v968_v37 = vsel %vm687_vm1, %v965_v42, %v967_v43  ;;  %v2354_v39 = vpack.i.bf16 %v963_v46, %v961_v3  ;;  %v1055_v52 = vrot.slane %v460_v22, 2  ;;  %v1049_v54 = vsel %vm776_vm3, %v1047_v57, %v1048_v13 }
  0x88   : > { %v1051_v23 = vsel %vm776_vm3, %v1048_v13, %v1050_v50  ;;  %v411_v55 = vsel %vm381_vm0, %v409_v48, %v410_v0  ;;  %v451_v56 = vsel %vm381_vm0, 0.0, %v409_v48  ;;  %vm582_vm11 = vcmp.ne.s32.totalorder %v3177_v16, 15 }
  0x89   : > { %2335 = vrot.lane.b32.xlu0 %v2334_v2, %s2480_s10  ;;  %v657_v60 = vsel %vm581_vm10, %v450_v49, 0.0  ;;  %v658_v21 = vsel %vm581_vm10, %v408_v1, 0.0  ;;  %v461_v33 = vsel %vm381_vm0, %v410_v0, 0.0  ;;  %v659_v4 = vsel %vm581_vm10, %v460_v22, 0.0 }
  0x8a   : > { %v2359_v36 = vpack.i.bf16 %v968_v37, %v966_v51  ;;  %v1054_v12 = vsel %vm776_vm3, %v1052_v8, %v1053_v47  ;;  %v1056_v27 = vsel %vm776_vm3, %v1053_v47, %v1055_v52  ;;  %v2364_v26 = vpack.i.bf16 %v1051_v23, %v1049_v54 }
  0x8b   : > { %2340 = vrot.lane.b32.xlu1 %v2339_v40, %s2480_s10  ;;  %v660_v10 = vsel %vm582_vm11, %v451_v56, 0.0  ;;  %v661_v32 = vsel %vm582_vm11, %v411_v55, 0.0  ;;  %v1207_v5 = vrot.slane %v657_v60, 1  ;;  %v1208_v1 = vrot.slane %v658_v21, 1 }
  0x8c   : > { %v662_v7 = vsel %vm582_vm11, %v461_v33, 0.0  ;;  %v1210_v11 = vrot.slane %v659_v4, 1  ;;  %v2369_v14 = vpack.i.bf16 %v1056_v27, %v1054_v12  ;;  %v1212_v31 = vrot.slane %v660_v10, 1 }
  0x8d   : > { %2345 = vrot.lane.b32.xlu0 %v2344_v41, %s2476_s14  ;;  %v1213_v2 = vrot.slane %v661_v32, 1  ;;  %v1295_v49 = vrot.slane %v657_v60, 2  ;;  %v2374_v22 = vpack.i.bf16 %v658_v21, %v657_v60  ;;  %v1215_v35 = vrot.slane %v662_v7, 1 }
  0x8e   : > { %v1296_v28 = vrot.slane %v658_v21, 2  ;;  %v1209_v40 = vsel %vm687_vm1, %v1207_v5, %v1208_v1  ;;  %v1211_v41 = vsel %vm687_vm1, %v1208_v1, %v1210_v11  ;;  %v1298_v16 = vrot.slane %v659_v4, 2 }
  0x8f   : > { %2350 = vrot.lane.b32.xlu1 %v2349_v25, %s2476_s14  ;;  %v1300_v42 = vrot.slane %v660_v10, 2  ;;  %v2379_v43 = vpack.i.bf16 %v661_v32, %v660_v10  ;;  %v1301_v3 = vrot.slane %v661_v32, 2  ;;  %v1214_v57 = vsel %vm687_vm1, %v1212_v31, %v1213_v2 }
  0x90   : > { %v1216_v13 = vsel %vm687_vm1, %v1213_v2, %v1215_v35  ;;  %v2384_v46 = vpack.i.bf16 %v1211_v41, %v1209_v40  ;;  %v1303_v50 = vrot.slane %v662_v7, 2  ;;  %v1297_v48 = vsel %vm776_vm3, %v1295_v49, %v1296_v28 }
  0x91   : > { %v3234_v61 = vpop.permute.xlu1 %2090  ;;  %2355 = vrot.lane.b32.xlu0 %v2354_v39, %s2477_s26  ;;  %v1299_v0 = vsel %vm776_vm3, %v1296_v28, %v1298_v16  ;;  %v2389_v51 = vpack.i.bf16 %v1216_v13, %v1214_v57  ;;  %v1302_v47 = vsel %vm776_vm3, %v1300_v42, %v1301_v3  ;;  %vm1353_vm1 = vcmask 31744  }
  0x92   : > { %v3238_v62 = vpop.permute.xlu0 %2085  ;;  %v1304_v37 = vsel %vm776_vm3, %v1301_v3, %v1303_v50  ;;  %v2394_v39 = vpack.i.bf16 %v1299_v0, %v1297_v48  ;;  %v2093_v55 = vunpack.i.h.bf16 %v3234_v61  ;;  %vm1370_vm12 = vcmask 64512  }
  0x93   : > { %2360 = vrot.lane.b32.xlu1 %v2359_v36, %s2477_s26  ;;  %v2399_v52 = vpack.i.bf16 %v1304_v37, %v1302_v47  ;;  %vm1387_vm13 = vcmask 97280   ;;  %vm1404_vm3 = vcmask 130048   ;;  %v2092_v12 = vunpack.i.l.bf16 %v3234_v61 }
  0x94   : > { %v2088_v27 = vunpack.i.h.bf16 %v3238_v62  ;;  %vm1421_vm14 = vcmask 162816   ;;  %vm1438_vm15 = vcmask 195584   ;;  %vm1455_vm2 = vcmask 228352  }
  0x95   : > { %2365 = vrot.lane.b32.xlu0 %v2364_v26, %s2478_s13  ;;  %v3248_v38 = vpop.permute.xlu1 %2100  ;;  %v2087_v26 = vunpack.i.l.bf16 %v3238_v62  ;;  %vm1472_vm4 = vcmask 261120   ;;  %vm1489_vm5 = vcmask 293888   ;;  %vm1750_vm7 = vcmask 1041408  }
  0x96   : > { %v2096_v20 = vpop.permute.xlu0 %2095  ;;  %v2103_v28 = vunpack.i.h.bf16 %v3248_v38  ;;  %v2102_v40 = vunpack.i.l.bf16 %v3248_v38  ;;  %vm3317_vm6 = vmpackc.low %vm1489_vm5, %vm1489_vm5 }
  0x97   : > { %2370 = vrot.lane.b32.xlu1 %v2369_v14, %s2478_s13  ;;  %v2098_v5 = vunpack.i.h.bf16 %v2096_v20  ;;  %v2097_v1 = vunpack.i.l.bf16 %v2096_v20  ;;  %s3454_s13 = scalar_lea.vmem %s3540_s4, %s1970_s8  ;;  %s1896_s8 = sshll.u32 %s297_s6, 3 }
  0x98   : > { %s299_s10 = scalar_lea.vmem [#allocation2], %s1896_s8 }
  0x99   : > { %2375 = vrot.lane.b32.xlu0 %v2374_v22, %s2479_s15  ;;  %v3258_v25 = vpop.permute.xlu1 %2110  ;;  %s1777_s12 = sshll.u32 %s299_s10, 4  ;;  %s3496_s12 = int_to_ptr.vmem [resolvable:$true] %s1777_s12 }
  0x9a   : > { %v2106_v8 = vpop.permute.xlu0 %2105  ;;  %v2113_v20 = vunpack.i.h.bf16 %v3258_v25  ;;  %v2112_v42 = vunpack.i.l.bf16 %v3258_v25  ;;  %s2412_s17 = scalar_lea.vmem %s3496_s12, 128  ;;  %p2419_p3 = scmp.lt.s32.totalorder %s3496_s12, %s2417_s11 }
  0x9b   : > { %2380 = vrot.lane.b32.xlu1 %v2379_v43, %s2479_s15  ;;  %v2108_v41 = vunpack.i.h.bf16 %v2106_v8  ;;  %v2107_v16 = vunpack.i.l.bf16 %v2106_v8  ;;  %s1960_s15 = sshll.u32 %s2536_s22, 7  ;;  %s1760_s22 = scalar_lea.sflag [#allocation3], %s297_s6 }
  0x9c   : > { %s3494_s16 = scalar_lea.hbm %s3541_s5, %s1960_s15  ;;  %p2413_p0 = scmp.ne.s32.totalorder %s3496_s12, %s2412_s17 }
  0x9d   : > { %2385 = vrot.lane.b32.xlu0 %v2384_v46, %s2482_s7  ;;  %v3266_v54 = vpop.permute.xlu1 %2120  ;;  %p2420_p4 = scmp.lt.s32.totalorder %s2418_s23, %s2412_s17 }
  0x9e   : > { %p2414_p1 = pnand %p2413_p0, %p2553_p5 }
  0x9f   : > { %2390 = vrot.lane.b32.xlu1 %v2389_v51, %s2482_s7  ;;  %p2421_p7 = por %p2420_p4, %p2419_p3 }
  0xa0   : > { %p2415_p2 = pneg %p2414_p1 }
  0xa1   : > { %2395 = vrot.lane.b32.xlu0 %v2394_v39, %s2483_s9  ;;  %v3268_v23 = vpop.permute.xlu0 %2115  ;;  %v2123_v39 = vunpack.i.h.bf16 %v3266_v54 }
  0xa2   : > { %p2422_p8 = pnand %p2421_p7, %p2415_p2 }
  0xa3   : > { %2400 = vrot.lane.b32.xlu1 %v2399_v52, %s2483_s9  ;;  %v2122_v52 = vunpack.i.l.bf16 %v3266_v54 }
  0xa6   : > { %v2131_v56 = vpop.permute.xlu1 %2130 }
  0xa7   : > { %v2126_v60 = vpop.permute.xlu0 %2125  ;;  %v2133_v21 = vunpack.i.h.bf16 %v2131_v56  ;;  %v2132_v33 = vunpack.i.l.bf16 %v2131_v56 }
  0xa8   : > { %v2128_v4 = vunpack.i.h.bf16 %v2126_v60  ;;  %v2127_v36 = vunpack.i.l.bf16 %v2126_v60 }
  0xaa   : > { %v1355_v10 = vsel %vm1353_vm1, %v2772_v45, %v2128_v4  ;;  %v1354_v32 = vsel %vm1353_vm1, %v2769_v44, %v2127_v36  ;;  %v2146_v61 = vpop.permute.xlu1 %2145 }
  0xab   : > { %v1372_v7 = vsel %vm1370_vm12, %v1355_v10, %v2133_v21  ;;  %v1371_v11 = vsel %vm1370_vm12, %v1354_v32, %v2132_v33  ;;  %v2136_v14 = vpop.permute.xlu0 %2135  ;;  %v2148_v45 = vunpack.i.h.bf16 %v2146_v61  ;;  %v2147_v2 = vunpack.i.l.bf16 %v2146_v61 }
  0xac   : > { %v1389_v62 = vsel %vm1387_vm13, %v1372_v7, %v2088_v27  ;;  %v1388_v31 = vsel %vm1387_vm13, %v1371_v11, %v2087_v26  ;;  %v2138_v49 = vunpack.i.h.bf16 %v2136_v14  ;;  %v2137_v44 = vunpack.i.l.bf16 %v2136_v14 }
  0xad   : > { %v1405_v22 = vsel %vm1404_vm3, %v1388_v31, %v2097_v1  ;;  %v1406_v35 = vsel %vm1404_vm3, %v1389_v62, %v2098_v5 }
  0xae   : > { %v1357_v43 = vsel %vm1353_vm1, %v2731_v17, %v2138_v49  ;;  %v1356_v3 = vsel %vm1353_vm1, %v2726_v9, %v2137_v44  ;;  %v2151_v57 = vpop.permute.xlu1 %2150  ;;  %v1422_v38 = vsel %vm1421_vm14, %v1405_v22, %v2107_v16  ;;  %v1423_v48 = vsel %vm1421_vm14, %v1406_v35, %v2108_v41 }
  0xaf   : > { %v2141_v13 = vpop.permute.xlu0 %2140  ;;  %v1374_v46 = vsel %vm1370_vm12, %v1357_v43, %v2148_v45  ;;  %v1373_v50 = vsel %vm1370_vm12, %v1356_v3, %v2147_v2  ;;  %v2118_v17 = vunpack.i.h.bf16 %v3268_v23  ;;  %v2117_v9 = vunpack.i.l.bf16 %v3268_v23 }
  0xb0   : > { %v1391_v0 = vsel %vm1387_vm13, %v1374_v46, %v2093_v55  ;;  %v1390_v25 = vsel %vm1387_vm13, %v1373_v50, %v2092_v12  ;;  %v2143_v51 = vunpack.i.h.bf16 %v2141_v13  ;;  %v2142_v8 = vunpack.i.l.bf16 %v2141_v13 }
  0xb1   : > { %v1407_v47 = vsel %vm1404_vm3, %v1390_v25, %v2102_v40  ;;  %v1408_v37 = vsel %vm1404_vm3, %v1391_v0, %v2103_v28  ;;  %v1439_v36 = vsel %vm1438_vm15, %v1422_v38, %v2117_v9  ;;  %v1440_v23 = vsel %vm1438_vm15, %v1423_v48, %v2118_v17 }
  0xb2   : > { %v1424_v56 = vsel %vm1421_vm14, %v1407_v47, %v2112_v42  ;;  %v1425_v55 = vsel %vm1421_vm14, %v1408_v37, %v2113_v20  ;;  %v2153_v12 = vunpack.i.h.bf16 %v2151_v57  ;;  %v2152_v27 = vunpack.i.l.bf16 %v2151_v57 }
  0xb3   : > { %v2156_v60 = vpop.permute.xlu0 %2155  ;;  %v2161_v21 = vpop.permute.xlu1 %2160  ;;  %v1456_v26 = vsel %vm1455_vm2, %v1439_v36, %v2142_v8  ;;  %v1457_v10 = vsel %vm1455_vm2, %v1440_v23, %v2143_v51  ;;  %v1441_v54 = vsel %vm1438_vm15, %v1424_v56, %v2122_v52  ;;  %v1442_v32 = vsel %vm1438_vm15, %v1425_v55, %v2123_v39 }
  0xb4   : > { %v2158_v33 = vunpack.i.h.bf16 %v2156_v60  ;;  %v2157_v4 = vunpack.i.l.bf16 %v2156_v60  ;;  %v1458_v31 = vsel %vm1455_vm2, %v1441_v54, %v2152_v27  ;;  %v1459_v45 = vsel %vm1455_vm2, %v1442_v32, %v2153_v12 }
  0xb5   : > { %v2163_v42 = vunpack.i.h.bf16 %v2161_v21  ;;  %v2162_v43 = vunpack.i.l.bf16 %v2161_v21 }
  0xb6   : > { %v1473_v5 = vsel %vm1472_vm4, %v1456_v26, %v2157_v4  ;;  %v1474_v1 = vsel %vm1472_vm4, %v1457_v10, %v2158_v33 }
  0xb7   : > { %v2166_v11 = vpop.permute.xlu0 %2165  ;;  %v1936_v61 = vpack.c.bf16 %v1474_v1, %v1473_v5  ;;  %v1359_v48 = vsel %vm1353_vm1, %v2859_v19, %v2163_v42  ;;  %v1358_v0 = vsel %vm1353_vm1, %v2856_v6, %v2162_v43 }
  0xb8   : > { %v2168_v14 = vunpack.i.h.bf16 %v2166_v11  ;;  %v2167_v62 = vunpack.i.l.bf16 %v2166_v11 }
  0xb9   : > { %2005 = vmatprep.mubr.msk.bf16.mxu0 %vm3317_vm6, %v1936_v61  ;;  %v2171_v2 = vpop.permute.xlu1 %2170 }
  0xba   : > { %v1475_v49 = vsel %vm1472_vm4, %v1458_v31, %v2167_v62  ;;  %v1476_v44 = vsel %vm1472_vm4, %v1459_v45, %v2168_v14  ;;  %v2173_v57 = vunpack.i.h.bf16 %v2171_v2  ;;  %v2172_v13 = vunpack.i.l.bf16 %v2171_v2 }
  0xbb   : > { %v1939_v22 = vpack.c.bf16 %v1476_v44, %v1475_v49  ;;  %v2176_v35 = vpop.permute.xlu0 %2175 }
  0xbc   : > { %v2178_v46 = vunpack.i.h.bf16 %v2176_v35  ;;  %v2177_v50 = vunpack.i.l.bf16 %v2176_v35  ;;  %v1361_v39 = vsel %vm1353_vm1, %v2891_v30, %v2173_v57  ;;  %v1360_v52 = vsel %vm1353_vm1, %v2888_v29, %v2172_v13 }
  0xbd   : > { %2006 = vmatmul.mubr.msk.bf16.vlgmr.msra.gmra.mrb[0].mxu0 %vm3317_vm6, %v1939_v22  ;;  %v2181_v28 = vpop.permute.xlu1 %2180 }
  0xbe   : > { %v2183_v25 = vunpack.i.h.bf16 %v2181_v28  ;;  %v2182_v51 = vunpack.i.l.bf16 %v2181_v28  ;;  %v1376_v19 = vsel %vm1370_vm12, %v1359_v48, %v2178_v46  ;;  %v1375_v60 = vsel %vm1370_vm12, %v1358_v0, %v2177_v50 }
  0xbf   : > { %v2186_v40 = vpop.permute.xlu0 %2185 }
  0xc0   : > { %v2188_v47 = vunpack.i.h.bf16 %v2186_v40  ;;  %v2187_v37 = vunpack.i.l.bf16 %v2186_v40  ;;  %v1377_v4 = vsel %vm1370_vm12, %v1360_v52, %v2182_v51  ;;  %v1378_v36 = vsel %vm1370_vm12, %v1361_v39, %v2183_v25 }
  0xc1   : > { %v2191_v41 = vpop.permute.xlu1 %2190 }
  0xc2   : > { %v2193_v17 = vunpack.i.h.bf16 %v2191_v41  ;;  %v2192_v9 = vunpack.i.l.bf16 %v2191_v41  ;;  %v1392_v26 = vsel %vm1387_vm13, %v1375_v60, %v2187_v37  ;;  %v1393_v10 = vsel %vm1387_vm13, %v1376_v19, %v2188_v47 }
  0xc3   : > { %v2196_v16 = vpop.permute.xlu0 %2195 }
  0xc4   : > { %v2198_v56 = vunpack.i.h.bf16 %v2196_v16  ;;  %v2197_v55 = vunpack.i.l.bf16 %v2196_v16  ;;  %v1394_v30 = vsel %vm1387_vm13, %v1377_v4, %v2192_v9  ;;  %v1395_v29 = vsel %vm1387_vm13, %v1378_v36, %v2193_v17 }
  0xc5   : > { %v2201_v20 = vpop.permute.xlu1 %2200 }
  0xc6   : > { %v1409_v54 = vsel %vm1404_vm3, %v1392_v26, %v2197_v55  ;;  %v1410_v32 = vsel %vm1404_vm3, %v1393_v10, %v2198_v56  ;;  %v2203_v11 = vunpack.i.h.bf16 %v2201_v20  ;;  %v2202_v61 = vunpack.i.l.bf16 %v2201_v20 }
  0xc7   : > { %v2206_v3 = vpop.permute.xlu0 %2205 }
  0xc8   : > { %v2208_v6 = vunpack.i.h.bf16 %v2206_v3  ;;  %v2207_v21 = vunpack.i.l.bf16 %v2206_v3  ;;  %v1411_v3 = vsel %vm1404_vm3, %v1394_v30, %v2202_v61  ;;  %v1412_v57 = vsel %vm1404_vm3, %v1395_v29, %v2203_v11 }
  0xc9   : > { %v2211_v38 = vpop.permute.xlu1 %2210 }
  0xca   : > { %v1426_v14 = vsel %vm1421_vm14, %v1409_v54, %v2207_v21  ;;  %v1427_v62 = vsel %vm1421_vm14, %v1410_v32, %v2208_v6  ;;  %v2213_v45 = vunpack.i.h.bf16 %v2211_v38  ;;  %v2212_v2 = vunpack.i.l.bf16 %v2211_v38 }
  0xcb   : > { %v2216_v8 = vpop.permute.xlu0 %2215 }
  0xcc   : > { %v2218_v23 = vunpack.i.h.bf16 %v2216_v8  ;;  %v2217_v12 = vunpack.i.l.bf16 %v2216_v8  ;;  %v1428_v38 = vsel %vm1421_vm14, %v1411_v3, %v2212_v2  ;;  %v1429_v48 = vsel %vm1421_vm14, %v1412_v57, %v2213_v45 }
  0xcd   : > { %v2221_v33 = vpop.permute.xlu1 %2220 }
  0xce   : > { %v1443_v49 = vsel %vm1438_vm15, %v1426_v14, %v2217_v12  ;;  %v1444_v44 = vsel %vm1438_vm15, %v1427_v62, %v2218_v23  ;;  %v2223_v35 = vunpack.i.h.bf16 %v2221_v33  ;;  %v2222_v28 = vunpack.i.l.bf16 %v2221_v33 }
  0xcf   : > { %v2226_v27 = vpop.permute.xlu0 %2225 }
  0xd0   : > { %v2228_v5 = vunpack.i.h.bf16 %v2226_v27  ;;  %v2227_v1 = vunpack.i.l.bf16 %v2226_v27  ;;  %v1445_v51 = vsel %vm1438_vm15, %v1428_v38, %v2222_v28  ;;  %v1446_v8 = vsel %vm1438_vm15, %v1429_v48, %v2223_v35 }
  0xd1   : > { %v2231_v31 = vpop.permute.xlu1 %2230 }
  0xd2   : > { %v2233_v16 = vunpack.i.h.bf16 %v2231_v31  ;;  %v2232_v42 = vunpack.i.l.bf16 %v2231_v31  ;;  %v1460_v20 = vsel %vm1455_vm2, %v1443_v49, %v2227_v1  ;;  %v1461_v43 = vsel %vm1455_vm2, %v1444_v44, %v2228_v5 }
  0xd3   : > { %v2236_v22 = vpop.permute.xlu0 %2235 }
  0xd4   : > { %v2238_v40 = vunpack.i.h.bf16 %v2236_v22  ;;  %v2237_v41 = vunpack.i.l.bf16 %v2236_v22  ;;  %v1462_v47 = vsel %vm1455_vm2, %v1445_v51, %v2232_v42  ;;  %v1463_v37 = vsel %vm1455_vm2, %v1446_v8, %v2233_v16 }
  0xd5   : > { %v2241_v13 = vpop.permute.xlu1 %2240 }
  0xd6   : > { %v1477_v46 = vsel %vm1472_vm4, %v1460_v20, %v2237_v41  ;;  %v1478_v50 = vsel %vm1472_vm4, %v1461_v43, %v2238_v40  ;;  %v2243_v36 = vunpack.i.h.bf16 %v2241_v13  ;;  %v2242_v23 = vunpack.i.l.bf16 %v2241_v13 }
  0xd7   : > { %v1942_v0 = vpack.c.bf16 %v1478_v50, %v1477_v46  ;;  %v2246_v25 = vpop.permute.xlu0 %2245 }
  0xd8   : > { %v2248_v17 = vunpack.i.h.bf16 %v2246_v25  ;;  %v2247_v9 = vunpack.i.l.bf16 %v2246_v25  ;;  %v1363_v54 = vsel %vm1353_vm1, %v3012_v53, %v2243_v36  ;;  %v1362_v32 = vsel %vm1353_vm1, %v3009_v18, %v2242_v23 }
  0xd9   : > { %2009 = vmatprep.mubr.msk.bf16.mxu0 %vm3317_vm6, %v1942_v0  ;;  %v2251_v39 = vpop.permute.xlu1 %2250 }
  0xda   : > { %v1480_v52 = vsel %vm1472_vm4, %v1463_v37, %v2248_v17  ;;  %v1479_v56 = vsel %vm1472_vm4, %v1462_v47, %v2247_v9  ;;  %v2253_v27 = vunpack.i.h.bf16 %v2251_v39  ;;  %v2252_v30 = vunpack.i.l.bf16 %v2251_v39 }
  0xdb   : > { %v1945_v55 = vpack.c.bf16 %v1480_v52, %v1479_v56  ;;  %v2256_v19 = vpop.permute.xlu0 %2255 }
  0xdc   : > { %v2258_v29 = vunpack.i.h.bf16 %v2256_v19  ;;  %v2257_v26 = vunpack.i.l.bf16 %v2256_v19  ;;  %v1365_v45 = vsel %vm1353_vm1, %v3023_v24, %v2253_v27  ;;  %v1364_v2 = vsel %vm1353_vm1, %v3020_v34, %v2252_v30 }
  0xdd   : > { %2010 = vmatmul.mubr.msk.bf16.gmra.mrb[4].mxu0 %vm3317_vm6, %v1945_v55  ;;  %v2261_v60 = vpop.permute.xlu1 %2260 }
  0xde   : > { %v2263_v5 = vunpack.i.h.bf16 %v2261_v60  ;;  %v2262_v1 = vunpack.i.l.bf16 %v2261_v60  ;;  %v1380_v53 = vsel %vm1370_vm12, %v1363_v54, %v2258_v29  ;;  %v1379_v22 = vsel %vm1370_vm12, %v1362_v32, %v2257_v26 }
  0xdf   : > { %v2266_v6 = vpop.permute.xlu0 %2265 }
  0xe0   : > { %v2268_v62 = vunpack.i.h.bf16 %v2266_v6  ;;  %v2267_v31 = vunpack.i.l.bf16 %v2266_v6  ;;  %v1381_v40 = vsel %vm1370_vm12, %v1364_v2, %v2262_v1  ;;  %v1382_v41 = vsel %vm1370_vm12, %v1365_v45, %v2263_v5 }
  0xe1   : > { %v2271_v21 = vpop.permute.xlu1 %2270 }
  0xe2   : > { %v2273_v61 = vunpack.i.h.bf16 %v2271_v21  ;;  %v2272_v14 = vunpack.i.l.bf16 %v2271_v21  ;;  %v1396_v43 = vsel %vm1387_vm13, %v1379_v22, %v2267_v31  ;;  %v1397_v3 = vsel %vm1387_vm13, %v1380_v53, %v2268_v62 }
  0xe3   : > { %v2276_v33 = vpop.permute.xlu0 %2275 }
  0xe4   : > { %v2278_v49 = vunpack.i.h.bf16 %v2276_v33  ;;  %v2277_v44 = vunpack.i.l.bf16 %v2276_v33  ;;  %v1398_v24 = vsel %vm1387_vm13, %v1381_v40, %v2272_v14  ;;  %v1399_v34 = vsel %vm1387_vm13, %v1382_v41, %v2273_v61 }
  0xe5   : > { %v2281_v4 = vpop.permute.xlu1 %2280 }
  0xe6   : > { %v1413_v57 = vsel %vm1404_vm3, %v1396_v43, %v2277_v44  ;;  %v1414_v13 = vsel %vm1404_vm3, %v1397_v3, %v2278_v49  ;;  %v2283_v38 = vunpack.i.h.bf16 %v2281_v4  ;;  %v2282_v48 = vunpack.i.l.bf16 %v2281_v4 }
  0xe7   : > { %v2286_v12 = vpop.permute.xlu0 %2285 }
  0xe8   : > { %v2288_v18 = vunpack.i.h.bf16 %v2286_v12  ;;  %v2287_v35 = vunpack.i.l.bf16 %v2286_v12  ;;  %v1415_v33 = vsel %vm1404_vm3, %v1398_v24, %v2282_v48  ;;  %v1416_v4 = vsel %vm1404_vm3, %v1399_v34, %v2283_v38 }
  0xe9   : > { %v2291_v10 = vpop.permute.xlu1 %2290 }
  0xea   : > { %v1430_v0 = vsel %vm1421_vm14, %v1413_v57, %v2287_v35  ;;  %v1431_v25 = vsel %vm1421_vm14, %v1414_v13, %v2288_v18  ;;  %v2293_v8 = vunpack.i.h.bf16 %v2291_v10  ;;  %v2292_v17 = vunpack.i.l.bf16 %v2291_v10 }
  0xeb   : > { %v2296_v11 = vpop.permute.xlu0 %2295 }
  0xec   : > { %v2298_v16 = vunpack.i.h.bf16 %v2296_v11  ;;  %v2297_v42 = vunpack.i.l.bf16 %v2296_v11  ;;  %v1432_v27 = vsel %vm1421_vm14, %v1415_v33, %v2292_v17  ;;  %v1433_v30 = vsel %vm1421_vm14, %v1416_v4, %v2293_v8 }
  0xed   : > { %v2301_v28 = vpop.permute.xlu1 %2300 }
  0xee   : > { %v1447_v9 = vsel %vm1438_vm15, %v1430_v0, %v2297_v42  ;;  %v1448_v47 = vsel %vm1438_vm15, %v1431_v25, %v2298_v16  ;;  %v2303_v39 = vunpack.i.h.bf16 %v2301_v28  ;;  %v2302_v52 = vunpack.i.l.bf16 %v2301_v28 }
  0xef   : > { %v2306_v20 = vpop.permute.xlu0 %2305 }
  0xf0   : > { %v2308_v46 = vunpack.i.h.bf16 %v2306_v20  ;;  %v2307_v50 = vunpack.i.l.bf16 %v2306_v20  ;;  %v1449_v10 = vsel %vm1438_vm15, %v1432_v27, %v2302_v52  ;;  %v1450_v54 = vsel %vm1438_vm15, %v1433_v30, %v2303_v39 }
  0xf1   : > { %v2311_v51 = vpop.permute.xlu1 %2310 }
  0xf2   : > { %v2313_v19 = vunpack.i.h.bf16 %v2311_v51  ;;  %v2312_v60 = vunpack.i.l.bf16 %v2311_v51  ;;  %v1464_v6 = vsel %vm1455_vm2, %v1447_v9, %v2307_v50  ;;  %v1465_v21 = vsel %vm1455_vm2, %v1448_v47, %v2308_v46 }
  0xf3   : > { %v2316_v37 = vpop.permute.xlu0 %2315 }
  0xf4   : > { %v2318_v56 = vunpack.i.h.bf16 %v2316_v37  ;;  %v2317_v55 = vunpack.i.l.bf16 %v2316_v37  ;;  %v1466_v1 = vsel %vm1455_vm2, %v1449_v10, %v2312_v60  ;;  %v1467_v11 = vsel %vm1455_vm2, %v1450_v54, %v2313_v19 }
  0xf5   : > { %v2321_v36 = vpop.permute.xlu1 %2320 }
  0xf6   : > { %v1481_v23 = vsel %vm1472_vm4, %v1464_v6, %v2317_v55  ;;  %v1482_v12 = vsel %vm1472_vm4, %v1465_v21, %v2318_v56  ;;  %v2323_v18 = vunpack.i.h.bf16 %v2321_v36  ;;  %v2322_v35 = vunpack.i.l.bf16 %v2321_v36 }
  0xf7   : > { %v2326_v29 = vpop.permute.xlu0 %2325  ;;  %v1948_v26 = vpack.c.bf16 %v1482_v12, %v1481_v23 }
  0xf8   : > { %v2328_v32 = vunpack.i.h.bf16 %v2326_v29  ;;  %v2327_v5 = vunpack.i.l.bf16 %v2326_v29  ;;  %v1367_v3 = vsel %vm1353_vm1, %v3161_v15, %v2323_v18  ;;  %v1366_v57 = vsel %vm1353_vm1, %v3158_v63, %v2322_v35 }
  0xf9   : > { %2013 = vmatprep.mubr.msk.bf16.mxu1 %vm3317_vm6, %v1948_v26  ;;  %v2331_v61 = vpop.permute.xlu1 %2330 }
  0xfa   : > { %v1484_v14 = vsel %vm1472_vm4, %v1467_v11, %v2328_v32  ;;  %v1483_v62 = vsel %vm1472_vm4, %v1466_v1, %v2327_v5  ;;  %v2332_v28 = vunpack.i.l.bf16 %v2331_v61  ;;  %v2333_v41 = vunpack.i.h.bf16 %v2331_v61 }
  0xfb   : > { %v1951_v31 = vpack.c.bf16 %v1484_v14, %v1483_v62  ;;  %v2336_v45 = vpop.permute.xlu0 %2335 }
  0xfc   : > { %v2338_v42 = vunpack.i.h.bf16 %v2336_v45  ;;  %v2337_v20 = vunpack.i.l.bf16 %v2336_v45  ;;  %v1368_v13 = vsel %vm1353_vm1, %v3184_v58, %v2332_v28  ;;  %v1369_v51 = vsel %vm1353_vm1, %v3187_v59, %v2333_v41 }
  0xfd   : > { %2014 = vmatmul.mubr.msk.bf16.vlgmr.msra.gmra.mrb[0].mxu1 %vm3317_vm6, %v1951_v31  ;;  %v2341_v2 = vpop.permute.xlu1 %2340 }
  0xfe   : > { %v2342_v16 = vunpack.i.l.bf16 %v2341_v2  ;;  %v2343_v24 = vunpack.i.h.bf16 %v2341_v2  ;;  %v1384_v17 = vsel %vm1370_vm12, %v1367_v3, %v2338_v42  ;;  %v1383_v15 = vsel %vm1370_vm12, %v1366_v57, %v2337_v20 }
  0xff   : > { %v2346_v49 = vpop.permute.xlu0 %2345 }
 0x100   : > { %v2347_v34 = vunpack.i.l.bf16 %v2346_v49  ;;  %v2348_v46 = vunpack.i.h.bf16 %v2346_v49  ;;  %v1385_v8 = vsel %vm1370_vm12, %v1368_v13, %v2342_v16  ;;  %v1386_v63 = vsel %vm1370_vm12, %v1369_v51, %v2343_v24 }
 0x101   : > { %v2351_v44 = vpop.permute.xlu1 %2350 }
 0x102   : > { %v2353_v38 = vunpack.i.h.bf16 %v2351_v44  ;;  %v2352_v48 = vunpack.i.l.bf16 %v2351_v44  ;;  %v1400_v9 = vsel %vm1387_vm13, %v1383_v15, %v2347_v34  ;;  %v1401_v39 = vsel %vm1387_vm13, %v1384_v17, %v2348_v46 }
 0x103   : > { %v2356_v53 = vpop.permute.xlu0 %2355 }
 0x104   : > { %v2358_v0 = vunpack.i.h.bf16 %v2356_v53  ;;  %v2357_v25 = vunpack.i.l.bf16 %v2356_v53  ;;  %v1402_v59 = vsel %vm1387_vm13, %v1385_v8, %v2352_v48  ;;  %v1403_v60 = vsel %vm1387_vm13, %v1386_v63, %v2353_v38 }
 0x105   : > { %v2361_v22 = vpop.permute.xlu1 %2360 }
 0x106   : > { %v2362_v52 = vunpack.i.l.bf16 %v2361_v22  ;;  %v1417_v6 = vsel %vm1404_vm3, %v1400_v9, %v2357_v25  ;;  %v1418_v21 = vsel %vm1404_vm3, %v1401_v39, %v2358_v0  ;;  %v2363_v33 = vunpack.i.h.bf16 %v2361_v22 }
 0x107   : > { %v2366_v40 = vpop.permute.xlu0 %2365 }
 0x108   : > { %v2368_v58 = vunpack.i.h.bf16 %v2366_v40  ;;  %v2367_v47 = vunpack.i.l.bf16 %v2366_v40  ;;  %v1419_v10 = vsel %vm1404_vm3, %v1402_v59, %v2362_v52  ;;  %v1420_v31 = vsel %vm1404_vm3, %v1403_v60, %v2363_v33 }
 0x109   : > { %v2371_v43 = vpop.permute.xlu1 %2370 }
 0x10a   : > { %v2372_v4 = vunpack.i.l.bf16 %v2371_v43  ;;  %v2373_v12 = vunpack.i.h.bf16 %v2371_v43  ;;  %v1434_v27 = vsel %vm1421_vm14, %v1417_v6, %v2367_v47  ;;  %v1435_v30 = vsel %vm1421_vm14, %v1418_v21, %v2368_v58 }
 0x10b   : > { %v2376_v50 = vpop.permute.xlu0 %2375 }
 0x10c   : > { %v2378_v56 = vunpack.i.h.bf16 %v2376_v50  ;;  %v2377_v55 = vunpack.i.l.bf16 %v2376_v50  ;;  %v1436_v45 = vsel %vm1421_vm14, %v1419_v10, %v2372_v4  ;;  %v1437_v44 = vsel %vm1421_vm14, %v1420_v31, %v2373_v12 }
 0x10d   : > { %v2381_v37 = vpop.permute.xlu1 %2380 }
 0x10e   : > { %v2382_v29 = vunpack.i.l.bf16 %v2381_v37  ;;  %v2383_v54 = vunpack.i.h.bf16 %v2381_v37  ;;  %v1451_v32 = vsel %vm1438_vm15, %v1434_v27, %v2377_v55  ;;  %v1452_v5 = vsel %vm1438_vm15, %v1435_v30, %v2378_v56 }
 0x10f   : > { %v2386_v19 = vpop.permute.xlu0 %2385 }
 0x110   : > { %v2388_v36 = vunpack.i.h.bf16 %v2386_v19  ;;  %v2387_v23 = vunpack.i.l.bf16 %v2386_v19  ;;  %v1453_v53 = vsel %vm1438_vm15, %v1436_v45, %v2382_v29  ;;  %v1454_v28 = vsel %vm1438_vm15, %v1437_v44, %v2383_v54 }
 0x111   : > { %v2391_v26 = vpop.permute.xlu1 %2390 }
 0x112   : > { %v2393_v11 = vunpack.i.h.bf16 %v2391_v26  ;;  %v2392_v61 = vunpack.i.l.bf16 %v2391_v26  ;;  %v1468_v2 = vsel %vm1455_vm2, %v1451_v32, %v2387_v23  ;;  %v1469_v49 = vsel %vm1455_vm2, %v1452_v5, %v2388_v36 }
 0x113   : > { %v2396_v1 = vpop.permute.xlu0 %2395 }
 0x114   : > { %v2398_v14 = vunpack.i.h.bf16 %v2396_v1  ;;  %v2397_v62 = vunpack.i.l.bf16 %v2396_v1  ;;  %v1470_v42 = vsel %vm1455_vm2, %v1453_v53, %v2392_v61  ;;  %v1471_v20 = vsel %vm1455_vm2, %v1454_v28, %v2393_v11 }
 0x115   : > { %v2401_v22 = vpop.permute.xlu1 %2400 }
 0x116   : > { %v1485_v18 = vsel %vm1472_vm4, %v1468_v2, %v2397_v62  ;;  %v1486_v35 = vsel %vm1472_vm4, %v1469_v49, %v2398_v14  ;;  %v2403_v40 = vunpack.i.h.bf16 %v2401_v22  ;;  %v2402_v41 = vunpack.i.l.bf16 %v2401_v22 }
 0x117   : > { %v1954_v16 = vpack.c.bf16 %v1486_v35, %v1485_v18 }
 0x118   : > { %v1487_v24 = vsel %vm1472_vm4, %v1470_v42, %v2402_v41  ;;  %v1488_v34 = vsel %vm1472_vm4, %v1471_v20, %v2403_v40 }
 0x119   : > { %2017 = vmatprep.mubr.msk.bf16.mxu1 %vm3317_vm6, %v1954_v16  ;;  %v1957_v43 = vpack.c.bf16 %v1488_v34, %v1487_v24 }
 0x11b   : > { %2018 = vmatmul.mubr.msk.bf16.gmra.mrb[4].mxu1 %vm3317_vm6, %v1957_v43 }
 0x190   : > { %v2007_v3 = vpop.f32.mrb[0].mxu0 }
 0x191   : > { %1677 = vst.msk [vmem:[%s3454_s13 + $0x10] sm:$0xff] %vm1370_vm12, %v2007_v3  ;;  %v1612_v57 = vpop.f32.mrb[1].mxu0  ;;  %v1714_v48 = vmul.f32 %v2007_v3, %v2007_v3 }
 0x192   : > { %1675 = vst.msk [vmem:[%s3454_s13] sm:$0xff] %vm1370_vm12, %v1612_v57  ;;  %v2008_v13 = vpop.f32.mrb[2].mxu0  ;;  %v1712_v46 = vmul.f32 %v1612_v57, %v1612_v57 }
 0x193   : > { %1678 = vst.msk [vmem:[%s3454_s13 + $0x18] sm:$0xff] %vm1370_vm12, %v2008_v13  ;;  %v1615_v7 = vpop.f32.mrb[3].mxu0  ;;  %v1715_v51 = vmul.f32 %v2008_v13, %v2008_v13 }
 0x194   : > { %1676 = vst.msk [vmem:[%s3454_s13 + $0x8] sm:$0xff] %vm1370_vm12, %v1615_v7  ;;  %v1691_v50 = vadd.f32 %v1615_v7, %v1612_v57  ;;  %v1713_v38 = vmul.f32 %v1615_v7, %v1615_v7 }
 0x196   : > { %v1692_v0 = vadd.f32 %v2007_v3, %v1691_v50  ;;  %v1728_v25 = vadd.f32 %v1713_v38, %v1712_v46 }
 0x198   : > { %v1729_v8 = vadd.f32 %v1728_v25, %v1714_v48  ;;  %v1693_v17 = vadd.f32 %v2008_v13, %v1692_v0 }
 0x19a   : > { %v1730_v15 = vadd.f32 %v1729_v8, %v1715_v51 }
 0x1b0   : > { %v2011_v63 = vpop.f32.mrb[4].mxu0 }
 0x1b1   : > { %1681 = vst.msk [vmem:[%s3454_s13 + $0x30] sm:$0xff] %vm1370_vm12, %v2011_v63  ;;  %v1628_v9 = vpop.f32.mrb[5].mxu0  ;;  %v1718_v19 = vmul.f32 %v2011_v63, %v2011_v63 }
 0x1b2   : > { %1679 = vst.msk [vmem:[%s3454_s13 + $0x20] sm:$0xff] %vm1370_vm12, %v1628_v9  ;;  %v1694_v58 = vadd.f32 %v1693_v17, %v1628_v9  ;;  %v1716_v47 = vmul.f32 %v1628_v9, %v1628_v9  ;;  %v2012_v37 = vpop.f32.mrb[6].mxu0 }
 0x1b3   : > { %1682 = vst.msk [vmem:[%s3454_s13 + $0x38] sm:$0xff] %vm1370_vm12, %v2012_v37  ;;  %v1631_v39 = vpop.f32.mrb[7].mxu0  ;;  %v1719_v6 = vmul.f32 %v2012_v37, %v2012_v37 }
 0x1b4   : > { %v1731_v52 = vadd.f32 %v1730_v15, %v1716_v47  ;;  %1680 = vst.msk [vmem:[%s3454_s13 + $0x28] sm:$0xff] %vm1370_vm12, %v1631_v39  ;;  %v1695_v56 = vadd.f32 %v1694_v58, %v1631_v39  ;;  %v1717_v55 = vmul.f32 %v1631_v39, %v1631_v39 }
 0x1b6   : > { %v1696_v59 = vadd.f32 %v2011_v63, %v1695_v56  ;;  %v1732_v60 = vadd.f32 %v1731_v52, %v1717_v55 }
 0x1b8   : > { %v1733_v21 = vadd.f32 %v1732_v60, %v1718_v19  ;;  %v1697_v33 = vadd.f32 %v2012_v37, %v1696_v59 }
 0x1ba   : > { %v1734_v4 = vadd.f32 %v1733_v21, %v1719_v6 }
 0x1d0   : > { %v2015_v36 = vpop.f32.mrb[0].mxu1 }
 0x1d1   : > { %1685 = vst.msk [vmem:[%s3454_s13 + $0x50] sm:$0xff] %vm1370_vm12, %v2015_v36  ;;  %v1644_v23 = vpop.f32.mrb[1].mxu1  ;;  %v1722_v32 = vmul.f32 %v2015_v36, %v2015_v36 }
 0x1d2   : > { %1683 = vst.msk [vmem:[%s3454_s13 + $0x40] sm:$0xff] %vm1370_vm12, %v1644_v23  ;;  %v1698_v12 = vadd.f32 %v1697_v33, %v1644_v23  ;;  %v1720_v27 = vmul.f32 %v1644_v23, %v1644_v23  ;;  %v2016_v30 = vpop.f32.mrb[2].mxu1 }
 0x1d3   : > { %1686 = vst.msk [vmem:[%s3454_s13 + $0x58] sm:$0xff] %vm1370_vm12, %v2016_v30  ;;  %v1647_v29 = vpop.f32.mrb[3].mxu1  ;;  %v1723_v11 = vmul.f32 %v2016_v30, %v2016_v30 }
 0x1d4   : > { %v1735_v26 = vadd.f32 %v1734_v4, %v1720_v27  ;;  %1684 = vst.msk [vmem:[%s3454_s13 + $0x48] sm:$0xff] %vm1370_vm12, %v1647_v29  ;;  %v1699_v10 = vadd.f32 %v1698_v12, %v1647_v29  ;;  %v1721_v54 = vmul.f32 %v1647_v29, %v1647_v29 }
 0x1d6   : > { %v1700_v5 = vadd.f32 %v2015_v36, %v1699_v10  ;;  %v1736_v1 = vadd.f32 %v1735_v26, %v1721_v54 }
 0x1d8   : > { %v1737_v61 = vadd.f32 %v1736_v1, %v1722_v32  ;;  %v1701_v14 = vadd.f32 %v2016_v30, %v1700_v5 }
 0x1da   : > { %v1738_v62 = vadd.f32 %v1737_v61, %v1723_v11 }
 0x1ee   : > { %v2019_v31 = vpop.f32.mrb[4].mxu1 }
 0x1ef   : > { %1689 = vst.msk [vmem:[%s3454_s13 + $0x70] sm:$0xff] %vm1370_vm12, %v2019_v31  ;;  %v1660_v45 = vpop.f32.mrb[5].mxu1  ;;  %v1726_v28 = vmul.f32 %v2019_v31, %v2019_v31 }
 0x1f0   : > { %1687 = vst.msk [vmem:[%s3454_s13 + $0x60] sm:$0xff] %vm1370_vm12, %v1660_v45  ;;  %v1702_v2 = vadd.f32 %v1701_v14, %v1660_v45  ;;  %v1724_v49 = vmul.f32 %v1660_v45, %v1660_v45  ;;  %v2020_v44 = vpop.f32.mrb[6].mxu1 }
 0x1f1   : > { %1690 = vst.msk [vmem:[%s3454_s13 + $0x78] sm:$0xff] %vm1370_vm12, %v2020_v44  ;;  %v1663_v53 = vpop.f32.mrb[7].mxu1  ;;  %v1727_v16 = vmul.f32 %v2020_v44, %v2020_v44 }
 0x1f2   : > { %v1739_v22 = vadd.f32 %v1738_v62, %v1724_v49  ;;  %1688 = vst.msk [vmem:[%s3454_s13 + $0x68] sm:$0xff] %vm1370_vm12, %v1663_v53  ;;  %v1703_v18 = vadd.f32 %v1702_v2, %v1663_v53  ;;  %v1725_v35 = vmul.f32 %v1663_v53, %v1663_v53 }
 0x1f4   : > { %v1704_v40 = vadd.f32 %v2019_v31, %v1703_v18  ;;  %v1740_v41 = vadd.f32 %v1739_v22, %v1725_v35 }
 0x1f6   : > { %v1705_v42 = vadd.f32 %v2020_v44, %v1704_v40  ;;  %v1741_v20 = vadd.f32 %v1740_v41, %v1726_v28 }
 0x1f8   : > { %v1706_v24 = vrot.slane %v1705_v42, 4  ;;  %v1742_v34 = vadd.f32 %v1741_v20, %v1727_v16 }
 0x1fa   : > { %v1707_v43 = vadd.f32 %v1706_v24, %v1705_v42  ;;  %v1743_v3 = vrot.slane %v1742_v34, 4 }
 0x1fc   : > { %v1708_v57 = vrot.slane %v1707_v43, 2  ;;  %v1744_v13 = vadd.f32 %v1743_v3, %v1742_v34 }
 0x1fe   : > { %v1709_v7 = vadd.f32 %v1708_v57, %v1707_v43  ;;  %v1745_v46 = vrot.slane %v1744_v13, 2 }
 0x200   : > { %v1710_v50 = vrot.slane %v1709_v7, 1  ;;  %v1746_v38 = vadd.f32 %v1745_v46, %v1744_v13 }
 0x202   : > { %v1747_v48 = vrot.slane %v1746_v38, 1  ;;  %v1711_v0 = vadd.f32 %v1710_v50, %v1709_v7 }
 0x204   : > { %v1748_v25 = vadd.f32 %v1747_v48, %v1746_v38 }
 0x206   : > { %v1749_v51 = vsel %vm381_vm0, %v1711_v0, %v1748_v25 }
 0x207   : > { %v1751_v8 = vsel %vm1750_vm7, %v1749_v51, 0.0 }
 0x208   : > { %1752 = vst [vmem:[%s299_s10] sm:$0xff] %v1751_v8 }
 0x209   : > { %2425 = shalt.err (!%p2422_p8)
}
 0x20a   : > { %s2426_s25 = scalar_lea.hbm %s3494_s16, 128  ;;  %s2430_s13 = scalar_lea.hbm %s3541_s5, 512 }
 0x20b   : > { %p2427_p9 = scmp.ne.s32.totalorder %s3494_s16, %s2426_s25  ;;  %p2431_p12 = scmp.lt.u32.totalorder %s3494_s16, %s3541_s5 }
 0x20c   : > { %p2432_p13 = scmp.lt.u32.totalorder %s2430_s13, %s2426_s25  ;;  %p2434_p1 = scmp.lt.u32.totalorder %s2426_s25, %s3494_s16 }
 0x20d   : > { %p2428_p10 = pnand %p2427_p9, %p2553_p5 }
 0x20e   : > { %p2433_p0 = por %p2432_p13, %p2431_p12 }
 0x20f   : > { %p2429_p11 = pneg %p2428_p10 }
 0x210   : > { %p2435_p2 = por %p2434_p1, %p2433_p0 }
 0x212   : > { %p2436_p3 = pnand %p2435_p2, %p2429_p11 }
 0x214   : > { %2439 = shalt.err (!%p2436_p3)
}
 0x215   : > { %2037 = dma.vmem_to_hbm [thread:$0]  (%p2553_p5), %s3496_s12, 128, %s3494_s16, %s1760_s22  }
 0x216 PF: > { %p2043_p4 = scmp.ge.s32.totalorder %s2474_s21, 2  ;;  %s1798_s15 = sand.u32 1, %s2462_s18  }
 0x217   : > { %s1799_s10 = scalar_lea.sflag [#allocation3], %s1798_s15 }
 0x218   : > { %p2040_p7 = pnand %p2043_p4, %p2557_p6 }
 0x21a   : > { %2457 = dma.done.wait (!%p2040_p7), %s1799_s10, 128  }
 0x21b   : > { %2459 = vsyncadd (!%p2040_p7), %s1799_s10, 4294967168  ;;  %p16_p8 = scmp.ge.s32.totalorder %s2540_s24, 6   ;;  %s3547_s18 = smov %s2466_s19 }
 0x21c   : > { %s3548_s19 = smov %s2470_s20  ;;  %s3549_s20 = smov %s2551_s27 }
 0x21d   : > { %s3550_s21 = smov %s2540_s24  ;;  %18 = sbr.rel (!%p16_p8) target bundleno = 3 (0x3), region = 89 }
 0x224   :  { %1804 = vsyncpa [#allocation3], 1 }
 0x225   :  { %1806 = vsyncpa [#allocation3 + $0x1], 1 }

</bundles_post_ra>
